<compile_context>
chip_gen: v7x
topology: tpu7x:2x2x1
jax: 0.10.0
libtpu: 0.0.40
codegen_flags: <defaults>
</compile_context>

<pallas_src>
import functools

import jax
import jax.numpy as jnp
from jax import lax
from jax.experimental import pallas as pl
from jax.experimental.pallas import tpu as pltpu


def _pointnet_loss_kernel(y_pred_ref, y_ref, in_rows_ref, feat_ref, out_ref,
                          ce_acc, oin_acc, oft_acc,
                          *, weight_decay: float, batch_size: float, ki: int):
    s = pl.program_id(1)

    # ---- init accumulators at the start of each core's pass -----------------
    @pl.when(s == 0)
    def _init():
        ce_acc[...] = jnp.zeros_like(ce_acc)
        oin_acc[...] = jnp.zeros_like(oin_acc)
        oft_acc[...] = jnp.zeros_like(oft_acc)

    # ---- cross-entropy partial sum (matches nn.CrossEntropyLoss) ------------
    logits = y_pred_ref[...].astype(jnp.float32)            # [bb, C]
    labels = y_ref[...]                                      # [bb, 1] int32
    bb, n_classes = logits.shape
    row_max = jnp.max(logits, axis=-1, keepdims=True)
    shifted = logits - row_max
    lse = jnp.log(jnp.sum(jnp.exp(shifted), axis=-1, keepdims=True)) + row_max
    cls_iota = lax.broadcasted_iota(jnp.int32, (bb, n_classes), 1)
    onehot = (cls_iota == labels).astype(jnp.float32)
    tgt = jnp.sum(onehot * logits, axis=-1, keepdims=True)   # [bb, 1]
    ce_acc[...] += jnp.sum(lse - tgt)

    # ---- 3x3 input-transform orthogonality (VPU only, no MXU) ---------------
    # in_rows_ref is [bb, 9] = rows of the 3x3 matrix flattened.
    # sum_b sum_ik (G - I)^2 = sum(G*G) - 2*sum_b tr(G_b) + bb*Ki,
    # with tr(A A^T) = ||A||_F^2.
    ai = in_rows_ref[...].astype(jnp.float32)                # [bb, 9]
    rows = [ai[:, 3 * r:3 * r + 3] for r in range(ki)]       # ki x [bb, 3]
    gsq = 0.0
    for i in range(ki):
        for k in range(ki):
            g = jnp.sum(rows[i] * rows[k], axis=-1, keepdims=True)   # [bb, 1]
            gsq = gsq + jnp.sum(g * g)
    tr_in = jnp.sum(ai * ai)
    oin_acc[...] += gsq - 2.0 * tr_in + float(ki) * bb

    # ---- 64x64 feature-transform orthogonality (MXU gram, f32 accumulate) ---
    af = feat_ref[...]                                       # [bb, Kf, Kf], native dtype
    kf = af.shape[-1]
    gram = jnp.einsum("bij,bkj->bik", af, af,
                      preferred_element_type=jnp.float32)    # A @ A^T, batched
    af32 = af.astype(jnp.float32)
    oft_acc[...] += (jnp.sum(gram * gram)
                     - 2.0 * jnp.sum(af32 * af32)
                     + float(kf) * bb)

    # ---- finalize: per-core partial loss (summed in the wrapper) ------------
    @pl.when(s == pl.num_programs(1) - 1)
    def _finalize():
        inv_b = 1.0 / batch_size
        ce = ce_acc[...] * inv_b
        o_in = oin_acc[...] * (1.0 / (batch_size * ki * ki))
        o_ft = oft_acc[...] * (1.0 / (batch_size * kf * kf))
        total = ce + (weight_decay * inv_b) * (o_in + o_ft)  # (1, 1)
        out_ref[...] = jnp.broadcast_to(total, out_ref.shape).astype(out_ref.dtype)


def _pick_block_b(batch: int, target: int = 128) -> int:
    """Largest batch block <= target that is a multiple of 8 and divides batch."""
    if batch <= target:
        return batch
    for bb in range(target, 0, -8):
        if batch % bb == 0:
            return bb
    return batch  # pathological batch size: fall back to a single block


def pointnet_loss(y_pred, y, input_matrix, feature_matrix,
                  weight_decay: float = 1e-4, block_b: int | None = None):
    B, C = y_pred.shape
    Ki = input_matrix.shape[-1]
    Kf = feature_matrix.shape[-1]

    if block_b is None:
        block_b = _pick_block_b(B)
    assert B % block_b == 0, "batch must be divisible by block_b"
    assert block_b == B or block_b % 8 == 0, "block_b must be a multiple of 8"
    num_blocks = B // block_b
    # Split the batch blocks across the 2 TensorCores of a v7x chip when possible
    # (harmless sequential outer axis on single-core v5e/v6e).
    ncores = 2 if (num_blocks >= 2 and num_blocks % 2 == 0) else 1
    steps = num_blocks // ncores

    # Tiny wrapper-side reshapes only (no dtype up-casts).
    y2 = y.astype(jnp.int32).reshape(B, 1)                    # labels for the kernel
    in_rows = input_matrix.reshape(B, Ki * Ki)                # [B, 9] -> VPU-friendly

    kernel = functools.partial(_pointnet_loss_kernel,
                               weight_decay=float(weight_decay),
                               batch_size=float(B), ki=int(Ki))

    p_bytes = jnp.dtype(y_pred.dtype).itemsize
    i_bytes = jnp.dtype(input_matrix.dtype).itemsize
    f_bytes = jnp.dtype(feature_matrix.dtype).itemsize
    cost = pl.CostEstimate(
        flops=int(2 * B * Kf ** 3 + 4 * B * Kf * Kf + 2 * B * Ki ** 3 + 8 * B * C),
        transcendentals=int(B * C + B),
        bytes_accessed=int(B * Kf * Kf * f_bytes + B * Ki * Ki * i_bytes
                           + B * C * p_bytes + B * 4 + ncores * 8 * 128 * 4),
    )

    grid_spec = pltpu.PrefetchScalarGridSpec(
        num_scalar_prefetch=0,
        grid=(ncores, steps),
        in_specs=[
            pl.BlockSpec((block_b, C), lambda c, s: (c * steps + s, 0)),
            pl.BlockSpec((block_b, 1), lambda c, s: (c * steps + s, 0)),
            pl.BlockSpec((block_b, Ki * Ki), lambda c, s: (c * steps + s, 0)),
            pl.BlockSpec((block_b, Kf, Kf), lambda c, s: (c * steps + s, 0, 0)),
        ],
        out_specs=pl.BlockSpec((8, 128), lambda c, s: (c, 0)),
        scratch_shapes=[pltpu.VMEM((1, 1), jnp.float32)] * 3,
    )

    out = pl.pallas_call(
        kernel,
        out_shape=jax.ShapeDtypeStruct((ncores * 8, 128), jnp.float32),
        grid_spec=grid_spec,
        compiler_params=pltpu.CompilerParams(
            dimension_semantics=("parallel", "arbitrary")),
        cost_estimate=cost,
    )(y_pred, y2, in_rows, feature_matrix)

    # One partial loss per core, broadcast over its (8,128) output tile.
    return jnp.sum(out[0::8, 0])


def _reference_loss(y_pred, y, input_matrix, feature_matrix, weight_decay=1e-4):
    # Pure-JAX reference mirroring the PyTorch module semantics.
    bs = y_pred.shape[0]
    logits = y_pred.astype(jnp.float32)
    logz = jax.nn.logsumexp(logits, axis=-1)
    tgt = jnp.take_along_axis(logits, y.reshape(-1, 1).astype(jnp.int32), axis=-1)[:, 0]
    class_loss = jnp.mean(logz - tgt)

    def mse_ortho(a):
        a = a.astype(jnp.float32)
        k = a.shape[-1]
        gram = jnp.einsum("bij,bkj->bik", a, a)
        eye = jnp.broadcast_to(jnp.eye(k, dtype=jnp.float32), gram.shape)
        return jnp.mean((gram - eye) ** 2)

    ortho = (mse_ortho(input_matrix) + mse_ortho(feature_matrix)) / float(bs)
    return class_loss + weight_decay * ortho


if __name__ == "__main__":
    key = jax.random.PRNGKey(0)
    k1, k2, k3, k4 = jax.random.split(key, 4)

    B, C, KI, KF = 32, 16, 3, 64
    y_pred = jax.random.normal(k1, (B, C), dtype=jnp.float32)
    y = jax.random.randint(k2, (B,), 0, C, dtype=jnp.int32)
    input_matrix = jax.random.normal(k3, (B, KI, KI), dtype=jnp.float32)
    feature_matrix = jax.random.normal(k4, (B, KF, KF), dtype=jnp.float32)

    # block_b=8 -> 4 batch blocks -> grid (2, 2): exercises the parallel core
    # split, the accumulation path and the init/finalize pl.when branches.
    loss = pointnet_loss(y_pred, y, input_matrix, feature_matrix,
                         weight_decay=1e-4, block_b=8)
    loss = jax.block_until_ready(loss)

    ref = _reference_loss(y_pred, y, input_matrix, feature_matrix, weight_decay=1e-4)
    ref = jax.block_until_ready(ref)

    assert jnp.allclose(loss, ref, rtol=1e-3, atol=1e-5), (loss, ref)
    print("KERNEL_OK")
</pallas_src>

<mosaic_0001>
module attributes {stable_mosaic.version = 11 : i64} {
  func.func @_pointnet_loss_kernel(%arg0: i32, %arg1: i32, %arg2: memref<8x16xf32, #tpu.memory_space<vmem>>, %arg3: memref<8x1xi32, #tpu.memory_space<vmem>>, %arg4: memref<8x9xf32, #tpu.memory_space<vmem>>, %arg5: memref<8x64x64xf32, #tpu.memory_space<vmem>>, %arg6: memref<8x128xf32, #tpu.memory_space<vmem>>, %arg7: memref<1x1xf32, #tpu.memory_space<vmem>>, %arg8: memref<1x1xf32, #tpu.memory_space<vmem>>, %arg9: memref<1x1xf32, #tpu.memory_space<vmem>>) attributes {dimension_semantics = [#tpu.dimension_semantics<parallel>, #tpu.dimension_semantics<arbitrary>], iteration_bounds = array<i64: 2, 2>, scalar_prefetch = 0 : i64, scratch_operands = 3 : i64, tpu.core_type = #tpu.core_type<tc>, window_params = [{transform_indices = @transform_0, window_bounds = array<i64: 8, 16>}, {transform_indices = @transform_1, window_bounds = array<i64: 8, 1>}, {transform_indices = @transform_2, window_bounds = array<i64: 8, 9>}, {transform_indices = @transform_3, window_bounds = array<i64: 8, 64, 64>}, {transform_indices = @transform_4, window_bounds = array<i64: 8, 128>}]} {
    %c0_i32 = arith.constant 0 : i32
    %0 = arith.cmpi eq, %arg1, %c0_i32 : i32
    %1 = arith.extui %0 : i1 to i32
    %c0_i32_0 = arith.constant 0 : i32
    %2 = arith.cmpi ne, %1, %c0_i32_0 : i32
    scf.if %2 {
      %cst_52 = arith.constant 0.000000e+00 : f32
      %150 = vector.broadcast %cst_52 : f32 to vector<1x1xf32>
      %c0_53 = arith.constant 0 : index
      %c0_54 = arith.constant 0 : index
      %151 = vector.load %arg7[%c0_53, %c0_54] : memref<1x1xf32, #tpu.memory_space<vmem>>, vector<1x1xf32>
      tpu.vector_store %arg7[%c0_53, %c0_54], %150 {strides = array<i32>} : memref<1x1xf32, #tpu.memory_space<vmem>>, vector<1x1xf32>,
      %cst_55 = arith.constant 0.000000e+00 : f32
      %152 = vector.broadcast %cst_55 : f32 to vector<1x1xf32>
      %c0_56 = arith.constant 0 : index
      %c0_57 = arith.constant 0 : index
      %153 = vector.load %arg8[%c0_56, %c0_57] : memref<1x1xf32, #tpu.memory_space<vmem>>, vector<1x1xf32>
      tpu.vector_store %arg8[%c0_56, %c0_57], %152 {strides = array<i32>} : memref<1x1xf32, #tpu.memory_space<vmem>>, vector<1x1xf32>,
      %cst_58 = arith.constant 0.000000e+00 : f32
      %154 = vector.broadcast %cst_58 : f32 to vector<1x1xf32>
      %c0_59 = arith.constant 0 : index
      %c0_60 = arith.constant 0 : index
      %155 = vector.load %arg9[%c0_59, %c0_60] : memref<1x1xf32, #tpu.memory_space<vmem>>, vector<1x1xf32>
      tpu.vector_store %arg9[%c0_59, %c0_60], %154 {strides = array<i32>} : memref<1x1xf32, #tpu.memory_space<vmem>>, vector<1x1xf32>,
    } else {
    }
    %c0 = arith.constant 0 : index
    %c0_1 = arith.constant 0 : index
    %3 = vector.load %arg2[%c0, %c0_1] : memref<8x16xf32, #tpu.memory_space<vmem>>, vector<8x16xf32>
    %c0_2 = arith.constant 0 : index
    %c0_3 = arith.constant 0 : index
    %4 = vector.load %arg3[%c0_2, %c0_3] : memref<8x1xi32, #tpu.memory_space<vmem>>, vector<8x1xi32>
    %cst = arith.constant dense<0xFF800000> : vector<8xf32>
    %5 = vector.multi_reduction <maximumf>, %3, %cst [1] : vector<8x16xf32> to vector<8xf32>
    %6 = vector.shape_cast %5 : vector<8xf32> to vector<8x1xf32>
    %7 = vector.broadcast %6 : vector<8x1xf32> to vector<8x16xf32>
    %8 = arith.subf %3, %7 : vector<8x16xf32>
    %9 = math.exp %8 : vector<8x16xf32>
    %cst_4 = arith.constant dense<0.000000e+00> : vector<8xf32>
    %10 = vector.multi_reduction <add>, %9, %cst_4 [1] : vector<8x16xf32> to vector<8xf32>
    %11 = vector.shape_cast %10 : vector<8xf32> to vector<8x1xf32>
    %12 = math.log %11 : vector<8x1xf32>
    %13 = arith.addf %12, %6 : vector<8x1xf32>
    %14 = tpu.iota {dimensions = array<i32: 1>} : vector<8x16xi32>
    %15 = vector.broadcast %4 : vector<8x1xi32> to vector<8x16xi32>
    %16 = arith.cmpi eq, %14, %15 : vector<8x16xi32>
    %17 = arith.extui %16 : vector<8x16xi1> to vector<8x16xi32>
    %18 = arith.sitofp %17 : vector<8x16xi32> to vector<8x16xf32>
    %19 = arith.mulf %18, %3 : vector<8x16xf32>
    %cst_5 = arith.constant dense<0.000000e+00> : vector<8xf32>
    %20 = vector.multi_reduction <add>, %19, %cst_5 [1] : vector<8x16xf32> to vector<8xf32>
    %21 = vector.shape_cast %20 : vector<8xf32> to vector<8x1xf32>
    %c0_6 = arith.constant 0 : index
    %c0_7 = arith.constant 0 : index
    %22 = vector.load %arg7[%c0_6, %c0_7] : memref<1x1xf32, #tpu.memory_space<vmem>>, vector<1x1xf32>
    %23 = arith.subf %13, %21 : vector<8x1xf32>
    %24 = vector.shape_cast %23 : vector<8x1xf32> to vector<1x8x1xf32>
    %cst_8 = arith.constant dense<0.000000e+00> : vector<1xf32>
    %25 = vector.multi_reduction <add>, %24, %cst_8 [1, 2] : vector<1x8x1xf32> to vector<1xf32>
    %26 = vector.shape_cast %25 : vector<1xf32> to vector<1x1x1xf32>
    %27 = vector.extract %26[0, 0, 0] : f32 from vector<1x1x1xf32>
    %28 = vector.broadcast %27 : f32 to vector<1x1xf32>
    %29 = arith.addf %22, %28 : vector<1x1xf32>
    %c0_9 = arith.constant 0 : index
    %c0_10 = arith.constant 0 : index
    %30 = vector.load %arg7[%c0_9, %c0_10] : memref<1x1xf32, #tpu.memory_space<vmem>>, vector<1x1xf32>
    tpu.vector_store %arg7[%c0_9, %c0_10], %29 {strides = array<i32>} : memref<1x1xf32, #tpu.memory_space<vmem>>, vector<1x1xf32>,
    %c0_11 = arith.constant 0 : index
    %c0_12 = arith.constant 0 : index
    %31 = vector.load %arg4[%c0_11, %c0_12] : memref<8x9xf32, #tpu.memory_space<vmem>>, vector<8x9xf32>
    %32 = vector.extract_strided_slice %31 {offsets = [0, 0], sizes = [8, 3], strides = [1, 1]} : vector<8x9xf32> to vector<8x3xf32>
    %33 = vector.extract_strided_slice %31 {offsets = [0, 3], sizes = [8, 3], strides = [1, 1]} : vector<8x9xf32> to vector<8x3xf32>
    %34 = vector.extract_strided_slice %31 {offsets = [0, 6], sizes = [8, 3], strides = [1, 1]} : vector<8x9xf32> to vector<8x3xf32>
    %35 = arith.mulf %32, %32 : vector<8x3xf32>
    %cst_13 = arith.constant dense<0.000000e+00> : vector<8xf32>
    %36 = vector.multi_reduction <add>, %35, %cst_13 [1] : vector<8x3xf32> to vector<8xf32>
    %37 = vector.shape_cast %36 : vector<8xf32> to vector<8x1xf32>
    %38 = arith.mulf %37, %37 : vector<8x1xf32>
    %39 = vector.shape_cast %38 : vector<8x1xf32> to vector<1x8x1xf32>
    %cst_14 = arith.constant dense<0.000000e+00> : vector<1xf32>
    %40 = vector.multi_reduction <add>, %39, %cst_14 [1, 2] : vector<1x8x1xf32> to vector<1xf32>
    %41 = vector.shape_cast %40 : vector<1xf32> to vector<1x1x1xf32>
    %42 = vector.extract %41[0, 0, 0] : f32 from vector<1x1x1xf32>
    %cst_15 = arith.constant 0.000000e+00 : f32
    %43 = arith.addf %cst_15, %42 : f32
    %44 = arith.mulf %32, %33 : vector<8x3xf32>
    %cst_16 = arith.constant dense<0.000000e+00> : vector<8xf32>
    %45 = vector.multi_reduction <add>, %44, %cst_16 [1] : vector<8x3xf32> to vector<8xf32>
    %46 = vector.shape_cast %45 : vector<8xf32> to vector<8x1xf32>
    %47 = arith.mulf %46, %46 : vector<8x1xf32>
    %48 = vector.shape_cast %47 : vector<8x1xf32> to vector<1x8x1xf32>
    %cst_17 = arith.constant dense<0.000000e+00> : vector<1xf32>
    %49 = vector.multi_reduction <add>, %48, %cst_17 [1, 2] : vector<1x8x1xf32> to vector<1xf32>
    %50 = vector.shape_cast %49 : vector<1xf32> to vector<1x1x1xf32>
    %51 = vector.extract %50[0, 0, 0] : f32 from vector<1x1x1xf32>
    %52 = arith.addf %43, %51 : f32
    %53 = arith.mulf %32, %34 : vector<8x3xf32>
    %cst_18 = arith.constant dense<0.000000e+00> : vector<8xf32>
    %54 = vector.multi_reduction <add>, %53, %cst_18 [1] : vector<8x3xf32> to vector<8xf32>
    %55 = vector.shape_cast %54 : vector<8xf32> to vector<8x1xf32>
    %56 = arith.mulf %55, %55 : vector<8x1xf32>
    %57 = vector.shape_cast %56 : vector<8x1xf32> to vector<1x8x1xf32>
    %cst_19 = arith.constant dense<0.000000e+00> : vector<1xf32>
    %58 = vector.multi_reduction <add>, %57, %cst_19 [1, 2] : vector<1x8x1xf32> to vector<1xf32>
    %59 = vector.shape_cast %58 : vector<1xf32> to vector<1x1x1xf32>
    %60 = vector.extract %59[0, 0, 0] : f32 from vector<1x1x1xf32>
    %61 = arith.addf %52, %60 : f32
    %62 = arith.mulf %33, %32 : vector<8x3xf32>
    %cst_20 = arith.constant dense<0.000000e+00> : vector<8xf32>
    %63 = vector.multi_reduction <add>, %62, %cst_20 [1] : vector<8x3xf32> to vector<8xf32>
    %64 = vector.shape_cast %63 : vector<8xf32> to vector<8x1xf32>
    %65 = arith.mulf %64, %64 : vector<8x1xf32>
    %66 = vector.shape_cast %65 : vector<8x1xf32> to vector<1x8x1xf32>
    %cst_21 = arith.constant dense<0.000000e+00> : vector<1xf32>
    %67 = vector.multi_reduction <add>, %66, %cst_21 [1, 2] : vector<1x8x1xf32> to vector<1xf32>
    %68 = vector.shape_cast %67 : vector<1xf32> to vector<1x1x1xf32>
    %69 = vector.extract %68[0, 0, 0] : f32 from vector<1x1x1xf32>
    %70 = arith.addf %61, %69 : f32
    %71 = arith.mulf %33, %33 : vector<8x3xf32>
    %cst_22 = arith.constant dense<0.000000e+00> : vector<8xf32>
    %72 = vector.multi_reduction <add>, %71, %cst_22 [1] : vector<8x3xf32> to vector<8xf32>
    %73 = vector.shape_cast %72 : vector<8xf32> to vector<8x1xf32>
    %74 = arith.mulf %73, %73 : vector<8x1xf32>
    %75 = vector.shape_cast %74 : vector<8x1xf32> to vector<1x8x1xf32>
    %cst_23 = arith.constant dense<0.000000e+00> : vector<1xf32>
    %76 = vector.multi_reduction <add>, %75, %cst_23 [1, 2] : vector<1x8x1xf32> to vector<1xf32>
    %77 = vector.shape_cast %76 : vector<1xf32> to vector<1x1x1xf32>
    %78 = vector.extract %77[0, 0, 0] : f32 from vector<1x1x1xf32>
    %79 = arith.addf %70, %78 : f32
    %80 = arith.mulf %33, %34 : vector<8x3xf32>
    %cst_24 = arith.constant dense<0.000000e+00> : vector<8xf32>
    %81 = vector.multi_reduction <add>, %80, %cst_24 [1] : vector<8x3xf32> to vector<8xf32>
    %82 = vector.shape_cast %81 : vector<8xf32> to vector<8x1xf32>
    %83 = arith.mulf %82, %82 : vector<8x1xf32>
    %84 = vector.shape_cast %83 : vector<8x1xf32> to vector<1x8x1xf32>
    %cst_25 = arith.constant dense<0.000000e+00> : vector<1xf32>
    %85 = vector.multi_reduction <add>, %84, %cst_25 [1, 2] : vector<1x8x1xf32> to vector<1xf32>
    %86 = vector.shape_cast %85 : vector<1xf32> to vector<1x1x1xf32>
    %87 = vector.extract %86[0, 0, 0] : f32 from vector<1x1x1xf32>
    %88 = arith.addf %79, %87 : f32
    %89 = arith.mulf %34, %32 : vector<8x3xf32>
    %cst_26 = arith.constant dense<0.000000e+00> : vector<8xf32>
    %90 = vector.multi_reduction <add>, %89, %cst_26 [1] : vector<8x3xf32> to vector<8xf32>
    %91 = vector.shape_cast %90 : vector<8xf32> to vector<8x1xf32>
    %92 = arith.mulf %91, %91 : vector<8x1xf32>
    %93 = vector.shape_cast %92 : vector<8x1xf32> to vector<1x8x1xf32>
    %cst_27 = arith.constant dense<0.000000e+00> : vector<1xf32>
    %94 = vector.multi_reduction <add>, %93, %cst_27 [1, 2] : vector<1x8x1xf32> to vector<1xf32>
    %95 = vector.shape_cast %94 : vector<1xf32> to vector<1x1x1xf32>
    %96 = vector.extract %95[0, 0, 0] : f32 from vector<1x1x1xf32>
    %97 = arith.addf %88, %96 : f32
    %98 = arith.mulf %34, %33 : vector<8x3xf32>
    %cst_28 = arith.constant dense<0.000000e+00> : vector<8xf32>
    %99 = vector.multi_reduction <add>, %98, %cst_28 [1] : vector<8x3xf32> to vector<8xf32>
    %100 = vector.shape_cast %99 : vector<8xf32> to vector<8x1xf32>
    %101 = arith.mulf %100, %100 : vector<8x1xf32>
    %102 = vector.shape_cast %101 : vector<8x1xf32> to vector<1x8x1xf32>
    %cst_29 = arith.constant dense<0.000000e+00> : vector<1xf32>
    %103 = vector.multi_reduction <add>, %102, %cst_29 [1, 2] : vector<1x8x1xf32> to vector<1xf32>
    %104 = vector.shape_cast %103 : vector<1xf32> to vector<1x1x1xf32>
    %105 = vector.extract %104[0, 0, 0] : f32 from vector<1x1x1xf32>
    %106 = arith.addf %97, %105 : f32
    %107 = arith.mulf %34, %34 : vector<8x3xf32>
    %cst_30 = arith.constant dense<0.000000e+00> : vector<8xf32>
    %108 = vector.multi_reduction <add>, %107, %cst_30 [1] : vector<8x3xf32> to vector<8xf32>
    %109 = vector.shape_cast %108 : vector<8xf32> to vector<8x1xf32>
    %110 = arith.mulf %109, %109 : vector<8x1xf32>
    %111 = vector.shape_cast %110 : vector<8x1xf32> to vector<1x8x1xf32>
    %cst_31 = arith.constant dense<0.000000e+00> : vector<1xf32>
    %112 = vector.multi_reduction <add>, %111, %cst_31 [1, 2] : vector<1x8x1xf32> to vector<1xf32>
    %113 = vector.shape_cast %112 : vector<1xf32> to vector<1x1x1xf32>
    %114 = vector.extract %113[0, 0, 0] : f32 from vector<1x1x1xf32>
    %115 = arith.addf %106, %114 : f32
    %116 = arith.mulf %31, %31 : vector<8x9xf32>
    %117 = vector.shape_cast %116 : vector<8x9xf32> to vector<1x8x9xf32>
    %cst_32 = arith.constant dense<0.000000e+00> : vector<1xf32>
    %118 = vector.multi_reduction <add>, %117, %cst_32 [1, 2] : vector<1x8x9xf32> to vector<1xf32>
    %119 = vector.shape_cast %118 : vector<1xf32> to vector<1x1x1xf32>
    %120 = vector.extract %119[0, 0, 0] : f32 from vector<1x1x1xf32>
    %c0_33 = arith.constant 0 : index
    %c0_34 = arith.constant 0 : index
    %121 = vector.load %arg8[%c0_33, %c0_34] : memref<1x1xf32, #tpu.memory_space<vmem>>, vector<1x1xf32>
    %cst_35 = arith.constant 2.000000e+00 : f32
    %122 = arith.mulf %cst_35, %120 : f32
    %123 = arith.subf %115, %122 : f32
    %cst_36 = arith.constant 2.400000e+01 : f32
    %124 = arith.addf %123, %cst_36 : f32
    %125 = vector.broadcast %124 : f32 to vector<1x1xf32>
    %126 = arith.addf %121, %125 : vector<1x1xf32>
    %c0_37 = arith.constant 0 : index
    %c0_38 = arith.constant 0 : index
    %127 = vector.load %arg8[%c0_37, %c0_38] : memref<1x1xf32, #tpu.memory_space<vmem>>, vector<1x1xf32>
    tpu.vector_store %arg8[%c0_37, %c0_38], %126 {strides = array<i32>} : memref<1x1xf32, #tpu.memory_space<vmem>>, vector<1x1xf32>,
    %c0_39 = arith.constant 0 : index
    %c0_40 = arith.constant 0 : index
    %c0_41 = arith.constant 0 : index
    %128 = vector.load %arg5[%c0_39, %c0_40, %c0_41] : memref<8x64x64xf32, #tpu.memory_space<vmem>>, vector<8x64x64xf32>
    "tpu.trace_start"() <{level = 10 : i32, message = "bij,bkj->bik"}> : () -> ()
    %cst_42 = arith.constant dense<0.000000e+00> : vector<8x64x64xf32>
    %129 = tpu.matmul %128, %128, %cst_42 {dimension_numbers = #tpu.dot_dimension_numbers<[2], [2], [1], [1], [0, 0, 0, 1, 1, 1], [0], [0]>} : vector<8x64x64xf32>, vector<8x64x64xf32>, vector<8x64x64xf32> -> vector<8x64x64xf32>
    "tpu.trace_stop"() : () -> ()
    %c0_43 = arith.constant 0 : index
    %c0_44 = arith.constant 0 : index
    %130 = vector.load %arg9[%c0_43, %c0_44] : memref<1x1xf32, #tpu.memory_space<vmem>>, vector<1x1xf32>
    %131 = arith.mulf %129, %129 : vector<8x64x64xf32>
    %132 = vector.shape_cast %131 : vector<8x64x64xf32> to vector<1x8x64x64xf32>
    %cst_45 = arith.constant dense<0.000000e+00> : vector<1xf32>
    %133 = vector.multi_reduction <add>, %132, %cst_45 [1, 2, 3] : vector<1x8x64x64xf32> to vector<1xf32>
    %134 = vector.shape_cast %133 : vector<1xf32> to vector<1x1x1x1xf32>
    %135 = vector.extract %134[0, 0, 0, 0] : f32 from vector<1x1x1x1xf32>
    %136 = arith.mulf %128, %128 : vector<8x64x64xf32>
    %137 = vector.shape_cast %136 : vector<8x64x64xf32> to vector<1x8x64x64xf32>
    %cst_46 = arith.constant dense<0.000000e+00> : vector<1xf32>
    %138 = vector.multi_reduction <add>, %137, %cst_46 [1, 2, 3] : vector<1x8x64x64xf32> to vector<1xf32>
    %139 = vector.shape_cast %138 : vector<1xf32> to vector<1x1x1x1xf32>
    %140 = vector.extract %139[0, 0, 0, 0] : f32 from vector<1x1x1x1xf32>
    %cst_47 = arith.constant 2.000000e+00 : f32
    %141 = arith.mulf %cst_47, %140 : f32
    %142 = arith.subf %135, %141 : f32
    %cst_48 = arith.constant 5.120000e+02 : f32
    %143 = arith.addf %142, %cst_48 : f32
    %144 = vector.broadcast %143 : f32 to vector<1x1xf32>
    %145 = arith.addf %130, %144 : vector<1x1xf32>
    %c0_49 = arith.constant 0 : index
    %c0_50 = arith.constant 0 : index
    %146 = vector.load %arg9[%c0_49, %c0_50] : memref<1x1xf32, #tpu.memory_space<vmem>>, vector<1x1xf32>
    tpu.vector_store %arg9[%c0_49, %c0_50], %145 {strides = array<i32>} : memref<1x1xf32, #tpu.memory_space<vmem>>, vector<1x1xf32>,
    %c1_i32 = arith.constant 1 : i32
    %147 = arith.cmpi eq, %arg1, %c1_i32 : i32
    %148 = arith.extui %147 : i1 to i32
    %c0_i32_51 = arith.constant 0 : i32
    %149 = arith.cmpi ne, %148, %c0_i32_51 : i32
    scf.if %149 {
      %c0_52 = arith.constant 0 : index
      %c0_53 = arith.constant 0 : index
      %150 = vector.load %arg7[%c0_52, %c0_53] : memref<1x1xf32, #tpu.memory_space<vmem>>, vector<1x1xf32>
      %cst_54 = arith.constant 3.125000e-02 : f32
      %151 = vector.broadcast %cst_54 : f32 to vector<1x1xf32>
      %152 = arith.mulf %150, %151 : vector<1x1xf32>
      %c0_55 = arith.constant 0 : index
      %c0_56 = arith.constant 0 : index
      %153 = vector.load %arg8[%c0_55, %c0_56] : memref<1x1xf32, #tpu.memory_space<vmem>>, vector<1x1xf32>
      %cst_57 = arith.constant 0.00347222225 : f32
      %154 = vector.broadcast %cst_57 : f32 to vector<1x1xf32>
      %155 = arith.mulf %153, %154 : vector<1x1xf32>
      %c0_58 = arith.constant 0 : index
      %c0_59 = arith.constant 0 : index
      %156 = vector.load %arg9[%c0_58, %c0_59] : memref<1x1xf32, #tpu.memory_space<vmem>>, vector<1x1xf32>
      %cst_60 = arith.constant 7.62939453E-6 : f32
      %157 = vector.broadcast %cst_60 : f32 to vector<1x1xf32>
      %158 = arith.mulf %156, %157 : vector<1x1xf32>
      %159 = arith.addf %155, %158 : vector<1x1xf32>
      %cst_61 = arith.constant 3.125000e-06 : f32
      %160 = vector.broadcast %cst_61 : f32 to vector<1x1xf32>
      %161 = arith.mulf %160, %159 : vector<1x1xf32>
      %162 = arith.addf %152, %161 : vector<1x1xf32>
      %163 = vector.shape_cast %162 : vector<1x1xf32> to vector<1x1xf32>
      %164 = vector.broadcast %163 : vector<1x1xf32> to vector<8x128xf32>
      %c0_62 = arith.constant 0 : index
      %c0_63 = arith.constant 0 : index
      %165 = vector.load %arg6[%c0_62, %c0_63] : memref<8x128xf32, #tpu.memory_space<vmem>>, vector<8x128xf32>
      tpu.vector_store %arg6[%c0_62, %c0_63], %164 {strides = array<i32>} : memref<8x128xf32, #tpu.memory_space<vmem>>, vector<8x128xf32>,
    } else {
    }
    return
  }
  func.func @transform_0(%arg0: i32, %arg1: i32) -> (i32, i32) {
    %c2_i32 = arith.constant 2 : i32
    %0 = arith.muli %arg0, %c2_i32 : i32
    %1 = arith.addi %0, %arg1 : i32
    %c0_i32 = arith.constant 0 : i32
    %c0_i32_0 = arith.constant 0 : i32
    return %1, %c0_i32 : i32, i32
  }
  func.func @transform_1(%arg0: i32, %arg1: i32) -> (i32, i32) {
    %c2_i32 = arith.constant 2 : i32
    %0 = arith.muli %arg0, %c2_i32 : i32
    %1 = arith.addi %0, %arg1 : i32
    %c0_i32 = arith.constant 0 : i32
    %c0_i32_0 = arith.constant 0 : i32
    return %1, %c0_i32 : i32, i32
  }
  func.func @transform_2(%arg0: i32, %arg1: i32) -> (i32, i32) {
    %c2_i32 = arith.constant 2 : i32
    %0 = arith.muli %arg0, %c2_i32 : i32
    %1 = arith.addi %0, %arg1 : i32
    %c0_i32 = arith.constant 0 : i32
    %c0_i32_0 = arith.constant 0 : i32
    return %1, %c0_i32 : i32, i32
  }
  func.func @transform_3(%arg0: i32, %arg1: i32) -> (i32, i32, i32) {
    %c2_i32 = arith.constant 2 : i32
    %0 = arith.muli %arg0, %c2_i32 : i32
    %1 = arith.addi %0, %arg1 : i32
    %c0_i32 = arith.constant 0 : i32
    %c0_i32_0 = arith.constant 0 : i32
    %c0_i32_1 = arith.constant 0 : i32
    return %1, %c0_i32, %c0_i32_0 : i32, i32, i32
  }
  func.func @transform_4(%arg0: i32, %arg1: i32) -> (i32, i32) {
    %c0_i32 = arith.constant 0 : i32
    %c0_i32_0 = arith.constant 0 : i32
    return %arg0, %c0_i32 : i32, i32
  }
}

</mosaic_0001>

<bundles_post_ra>
// kernel: tpu_custom_call.1
= control target key start
LH: loop header
LB: loop body
LE: loop exit
PB: predicated region body
PF: predicated region fallthrough
CT: control target
= control target key end

     0   :  { %s4284_s0 = inlined_call_operand.vmem [shape: f32[32,16], index: 0, kind: input, shape index: {}]   ;;  %s4285_s1 = inlined_call_operand.vmem [shape: s32[32,1], index: 1, kind: input, shape index: {}]   ;;  %s4286_s2 = inlined_call_operand.vmem [shape: f32[32,9], index: 2, kind: input, shape index: {}]   ;;  %s4287_s3 = inlined_call_operand.hbm [shape: f32[32,64,64], index: 3, kind: input, shape index: {}]   ;;  %s4288_s4 = inlined_call_operand.hbm [shape: f32[16,128], index: 4, kind: output, shape index: {}]  }
   0x1   :  { %4297 = sst [smem:[#allocation19_spill]] %s4284_s0 }
   0x2   :  { %4298 = sst [smem:[#allocation20_spill]] %s4285_s1 }
   0x3   :  { %4299 = sst [smem:[#allocation21_spill]] %s4286_s2 }
   0x4   :  { %4300 = sst [smem:[#allocation22_spill]] %s4287_s3 }
   0x5   :  { %9 = vsyncpa [#allocation6], 0 }
   0x6   :  { %11 = vsyncpa [#allocation6 + $0x1], 0 }
   0x7   :  { %12 = vsyncpa [#allocation7], 0 }
   0x8   :  { %14 = vsyncpa [#allocation7 + $0x1], 0  ;;  %s3210_s15 = smov 0   ;;  %s3212_s16 = smov 0  }
   0x9   :  { %s3214_s17 = smov 0   ;;  %s3216_s18 = smov 0  }
   0xa   :  { %s3218_s19 = smov 0   ;;  %s3220_s20 = smov 0  }
   0xb   :  { %s3222_s21 = smov 0   ;;  %s3224_s22 = smov 0  }
   0xc   :  { %s3226_s23 = smov 0   ;;  %s3228_s24 = smov 0  }
   0xd   :  { %s3230_s25 = smov 0  }
   0xe LB: > { %4301 = sst [smem:[#allocation11_spill]] %s3149_s19  ;;  %s2177_s26 = sadd.s32 4294967295, %s3173_s25   ;;  %s3173_s25 = sphi %s3230_s25, %s20_s25   ;;  %s3169_s24 = sphi %s3228_s24, %s4333_s24   ;;  %s3165_s23 = sphi %s3226_s23, %s4332_s23   ;;  %s3161_s22 = sphi %s3224_s22, %s4331_s22   ;;  %s3157_s21 = sphi %s3222_s21, %s4330_s21   ;;  %s3153_s20 = sphi %s3220_s20, %s4329_s20   ;;  %s3149_s19 = sphi %s3218_s19, %s4328_s19   ;;  %s3145_s18 = sphi %s3216_s18, %s4327_s18   ;;  %s3141_s17 = sphi %s3214_s17, %s4336_s17   ;;  %s3137_s16 = sphi %s3212_s16, %s4335_s16   ;;  %s3133_s15 = sphi %s3210_s15, %s4334_s15  }
   0xf   : > { %4302 = sst [smem:[#allocation12_spill]] %s3153_s20  ;;  %s2178_s27 = sadd.s32 4294967294, %s3173_s25  }
  0x10   : > { %4303 = sst [smem:[#allocation13_spill]] %s3165_s23  ;;  %s29_s28 = sadd.s32 1, %s3165_s23 }
  0x11   : > { %4304 = sst [smem:[#allocation14_spill]] %s3169_s24  ;;  %s32_s29 = sadd.s32 1, %s3169_s24 }
  0x12   : > { %p30_p0 = scmp.ge.s32.totalorder %s29_s28, 2  ;;  %s2185_s30 = sshll.u32 %s3169_s24, 1 }
  0x13   : > { %s3269_s5 = sadd.s32 %s3165_s23, %s2185_s30  ;;  %s133_s6 = sadd.s32 1, %s3153_s20 }
  0x14   : > { %s4338_s28 = smov (%p30_p0, %s29_s28), 0  ;;  %s4340_s29 = smov (!%p30_p0, %s32_s29), %s3169_s24 }
  0x15   : > { %4305 = sst [smem:[#allocation15_spill]] %s4338_s28  ;;  %p140_p1 = scmp.ne.s32.totalorder %s3153_s20, %s3149_s19 }
  0x16   : > { %p141_p2 = scmp.eq.s32.totalorder %s3173_s25, 0  ;;  %p34_p3 = scmp.ge.s32.totalorder %s4340_s29, 2 }
  0x17   : > { %p146_p4 = scmp.ne.s32.totalorder %s3149_s19, %s3145_s18  ;;  %p147_p6 = scmp.eq.s32.totalorder %s2177_s26, 0 }
  0x18   : > { %p3279_p5 = por %p141_p2, %p140_p1  ;;  %s4342_s29 = smov (%p34_p3, %s4340_s29), 0 }
  0x19   : > { %4307 = sst [smem:[#allocation16_spill]] %s4342_s29  ;;  %p3285_p7 = por %p147_p6, %p146_p4 }
  0x1a   : > { %s159_s9 = sadd.s32 1, %s3141_s17  ;;  %s2186_s10 = sshll.u32 %s4342_s29, 1 }
  0x1b   : > { %s156_s11 = ssub.s32 %s3169_s24, %s4342_s29  ;;  %s129_s12 = sadd.s32 %s2186_s10, %s4338_s28 }
  0x1c   : > { %p157_p8 = scmp.eq.s32.totalorder %s156_s11, 0  ;;  %s130_s13 = ssub.s32 %s3269_s5, %s129_s12 }
  0x1d   : > { %p169_p9 = scmp.ne.s32.totalorder %s3141_s17, %s3137_s16  ;;  %p131_p10 = scmp.eq.s32.totalorder %s130_s13, 0 }
  0x1e   : > { %p170_p11 = scmp.eq.s32.totalorder %s2177_s26, 3  ;;  %p175_p13 = scmp.ne.s32.totalorder %s3137_s16, %s3133_s15 }
  0x1f   : > { %s3298_s14 = scalar_select %p157_p8, %s3141_s17, %s159_s9  }
  0x20   : > { %s3301_s18 = scalar_select %p131_p10, %s3153_s20, %s133_s6  }
  0x21   : > { %4309 = sst [smem:[#allocation17_spill]] %s3298_s14  ;;  %p3303_p12 = por %p170_p11, %p169_p9 }
  0x22   : > { %4310 = sst [smem:[#allocation18_spill]] %s3301_s18  ;;  %p176_p0 = scmp.eq.s32.totalorder %s2178_s27, 3 }
  0x23   : > { %s4311_s30 = scalar_select %p3303_p12, 1, 0 }
  0x24   : > { %p2916_p1 = scmp.lt.s32.totalorder %s3173_s25, 4  ;;  %s229_s29 = sand.u32 1, %s3153_s20  }
  0x25   : > { %p3313_p2 = por %p176_p0, %p175_p13  ;;  %s2189_s11 = sshll.u32 %s229_s29, 9 }
  0x26   : > { %s2339_s12 = sshll.u32 %s3269_s5, 13  ;;  %s4313_s3 = sld [smem:[#allocation22_spill]] }
  0x27   : > { %s4312_s10 = scalar_select %p3313_p2, 1, 0 }
  0x28   : > { %s233_s13 = scalar_lea.vmem [#allocation5], %s2189_s11  ;;  %p3325_p3 = pnand %p2916_p1, %p3279_p5 }
  0x29   : > { %s243_s28 = sshll.u32 %s233_s13, 4  ;;  %s3331_s5 = scalar_lea.sflag [#allocation6], %s229_s29  ;;  %s3329_s28 = int_to_ptr.vmem [resolvable:$true] %s243_s28 }
  0x2a   : > { %p3023_p6 = pneg %p3325_p3 }
  0x2c   : > { %s3321_s6 = scalar_lea.hbm %s4313_s3, %s2339_s12  ;;  %s3026_s12 = scalar_lea.hbm %s4313_s3, 32768 }
  0x2d   : > { %s3021_s26 = scalar_lea.hbm %s3321_s6, 8192  ;;  %p3027_p5 = scmp.lt.u32.totalorder %s3321_s6, %s4313_s3 }
  0x2e   : > { %p3022_p4 = scmp.ne.s32.totalorder %s3321_s6, %s3021_s26  ;;  %p3028_p10 = scmp.lt.u32.totalorder %s3026_s12, %s3021_s26 }
  0x2f   : > { %p3030_p13 = scmp.lt.u32.totalorder %s3021_s26, %s3321_s6 }
  0x30   : > { %p3024_p8 = pnand %p3023_p6, %p3022_p4  ;;  %p3029_p11 = por %p3028_p10, %p3027_p5 }
  0x32   : > { %p3025_p9 = pneg %p3024_p8  ;;  %p3031_p0 = por %p3030_p13, %p3029_p11 }
  0x34   : > { %p3032_p1 = pnand %p3031_p0, %p3025_p9 }
  0x36   : > { %3035 = shalt.err (!%p3032_p1)
}
  0x37   : > { %s3036_s29 = scalar_lea.vmem %s3329_s28, 8192  ;;  %s3175_s11 = smov [#allocation5]  }
  0x38   : > { %p3037_p4 = scmp.ne.s32.totalorder %s3329_s28, %s3036_s29  ;;  %s3041_s7 = sshll.u32 %s3175_s11, 4  ;;  %s3042_s7 = int_to_ptr.vmem [resolvable:$false] %s3041_s7 }
  0x39   : > { %s3043_s9 = scalar_lea.vmem %s3042_s7, 16384  ;;  %p3044_p12 = scmp.lt.s32.totalorder %s3329_s28, %s3042_s7 }
  0x3a   : > { %p3039_p8 = pnand %p3037_p4, %p3023_p6  ;;  %p3045_p5 = scmp.lt.s32.totalorder %s3043_s9, %s3036_s29 }
  0x3c   : > { %p3040_p2 = pneg %p3039_p8  ;;  %p3046_p10 = por %p3045_p5, %p3044_p12 }
  0x3e   : > { %p3047_p11 = pnand %p3046_p10, %p3040_p2 }
  0x40   : > { %3050 = shalt.err (!%p3047_p11)
}
  0x41   : > { %s3176_s26 = smov 128   ;;  %s3177_s12 = smov 8  }
  0x42   : > { %2911 = dma.hbm_to_vmem [thread:$0]  (!%p3325_p3), %s3321_s6, 8192, %s3329_s28, %s3331_s5, %s3176_s26, %s3176_s26, %s3177_s12  }
  0x43   : > { %p2194_p6 = scmp.ge.s32.totalorder %s3173_s25, 1  ;;  %p251_p9 = scmp.lt.s32.totalorder %s3173_s25, 5 }
  0x45   : > { %p252_p13 = pnand %p2194_p6, %p251_p9 }
  0x46   : > { %s257_s13 = sand.u32 (!%p252_p13), 1, %s3149_s19  }
  0x47   : > { %255 = sbr.rel (%p252_p13) target bundleno = 867 (0x363), region = 36  ;;  %s2195_s29 = sshll.u32 (!%p252_p13), %s257_s13, 9 }
  0x48   : > { %s258_s11 = scalar_lea.sflag (!%p252_p13), [#allocation6], %s257_s13  ;;  %s3362_s7 = scalar_lea.vmem (!%p252_p13), [#allocation5], %s2195_s29 }
  0x4e   : > { %3124 = dma.done.wait (%p3285_p7), %s258_s11, 8192  }
  0x4f   : > { %3126 = vsyncadd (%p3285_p7), %s258_s11, 4294959104  ;;  %s4292_s28 = sand.u32 1, %s3137_s16   ;;  %s2197_s6 = sshll.u32 %s3161_s22, 1 }
  0x50   : > { %s3372_s27 = sshll.u32 %s4292_s28, 3  ;;  %s305_s5 = sadd.s32 %s3157_s21, %s2197_s6 }
  0x51   : > { %p306_p12 = scmp.lt.s32.totalorder %s305_s5, 3  ;;  %s4315_s0 = sld [smem:[#allocation19_spill]] }
  0x52   : > { %s4316_s1 = sld [smem:[#allocation20_spill]]  ;;  %s4317_s2 = sld [smem:[#allocation21_spill]] }
  0x53   : > { %s4344_s5 = smov (!%p306_p12, %s305_s5), 3  ;;  %p2203_p7 = scmp.ne.s32.totalorder %s3157_s21, 0 }
  0x54   : > { %s3375_s9 = sshll.u32 %s4344_s5, 3  ;;  %vm335_vm0 = vcmask (!%p2203_p7), 0   ;;  %v3178_v0 = vmov (!%p2203_p7), 0.0  }
  0x55   : > { %334 = sbr.rel (%p2203_p7) target bundleno = 92 (0x5c), region = 44  ;;  %336 = vst.msk [vmem:[#allocation2] sm:$0x1] (!%p2203_p7), %vm335_vm0, %v3178_v0  ;;  %337 = vst.msk [vmem:[#allocation3] sm:$0x1] (!%p2203_p7), %vm335_vm0, %v3178_v0 }
  0x56   : > { %338 = vst.msk [vmem:[#allocation4] sm:$0x1] (!%p2203_p7), %vm335_vm0, %v3178_v0 }
  0x57   : > { %s309_s8 = scalar_lea.vmem %s4315_s0, %s3375_s9 }
  0x58   : > { %s317_s11 = scalar_lea.vmem %s4316_s1, %s3375_s9  ;;  %s325_s24 = scalar_lea.vmem %s4317_s2, %s3375_s9 }
  0x5c PF: > { %v3391_v1 = vld [vmem:[%s325_s24] sm:$0xff]  ;;  %vm581_vm1 = vcmask 523264   ;;  %s3179_s3 = smov 125   ;;  %v3180_v4 = vmov 0   ;;  %v3397_v5 = vld [vmem:[%s3362_s7 + $0x8] sm:$0xff]  ;;  %v3406_v8 = vld [vmem:[%s3362_s7 + $0x10] sm:$0xff] }
  0x5d   : > { %v340_v2 = vld [vmem:[%s317_s11] sm:$0xff]  ;;  %402 = vrot.lane.b32.xlu0 %v3391_v1, %s3179_s3  ;;  %3014 = vset.pattern.permute.xlu1 %v3180_v4  ;;  %vm3401_vm2 = vmpackc.low %vm581_vm1, %vm581_vm1  ;;  %v1816_v10 = vmul.f32 %v3397_v5, %v3397_v5  ;;  %v1817_v12 = vmul.f32 %v3406_v8, %v3406_v8  ;;  %v3433_v21 = vld [vmem:[%s3362_s7 + $0x48] sm:$0xff]  ;;  %s3181_s24 = smov 122   ;;  %v3457_v29 = vmul.f32 %v3391_v1, %v3391_v1  ;;  %vm341_vm3 = vcmask 130048   ;;  %p2333_p2 = scmp.ne.s32.totalorder %s3157_s21, 1 }
  0x5e   : > { %v517_v3 = vld [vmem:[%s3362_s7] sm:$0xff]  ;;  %357 = vperm.xlu1 %3014, %v340_v2   ;;  %v3412_v11 = vld [vmem:[%s3362_s7 + $0x18] sm:$0xff]  ;;  %3015 = vset.pattern.permute.xlu0 %v3180_v4  ;;  %v3439_v23 = vld [vmem:[%s3362_s7 + $0x28] sm:$0xff]  ;;  %v1824_v47 = vmul.f32 %v3433_v21, %v3433_v21  ;;  %vm385_vm5 = vcmask 23552   ;;  %vm368_vm6 = vcmask 7168   ;;  %vm499_vm7 = vcmask 72704  }
  0x5f   : > { %v1815_v7 = vmul.f32 %v517_v3, %v517_v3  ;;  %v2692_v9 = vpack.c.bf16 %v3397_v5, %v517_v3  ;;  %2484 = vmatprep.mubr.msk.f32.mxu0 %vm581_vm1, %v517_v3  ;;  %v2698_v14 = vpack.c.bf16 %v3412_v11, %v3406_v8  ;;  %v1818_v15 = vmul.f32 %v3412_v11, %v3412_v11  ;;  %v3423_v16 = vld [vmem:[%s3362_s7 + $0x20] sm:$0xff]  ;;  %v3443_v25 = vld [vmem:[%s3362_s7 + $0x50] sm:$0xff]  ;;  %v3446_v26 = vld [vmem:[%s3362_s7 + $0x58] sm:$0xff] }
  0x60   : > { %v525_v17 = vld [vmem:[%s3362_s7 + $0x40] sm:$0xff]  ;;  %v1880_v18 = vsel %vm581_vm1, %v1816_v10, 0.0  ;;  %v1882_v19 = vsel %vm581_vm1, %v1817_v12, 0.0  ;;  %v1819_v20 = vmul.f32 %v3423_v16, %v3423_v16  ;;  %v1820_v28 = vmul.f32 %v3439_v23, %v3439_v23  ;;  %v3460_v31 = vld [vmem:[%s3362_s7 + $0x30] sm:$0xff]  ;;  %v3472_v36 = vld [vmem:[%s3362_s7 + $0x38] sm:$0xff] }
  0x61   : > { %v1879_v13 = vsel %vm581_vm1, %v1815_v7, 0.0  ;;  %2694 = vmatprep.subr.msk.bf16.mxu0 %vm3401_vm2, %v2692_v9  ;;  %2512 = vmatprep.mubr.msk.f32.mxu1 %vm581_vm1, %v525_v17  ;;  %v2716_v24 = vpack.c.bf16 %v3433_v21, %v525_v17  ;;  %v1884_v27 = vsel %vm581_vm1, %v1818_v15, 0.0  ;;  %v1821_v33 = vmul.f32 %v3460_v31, %v3460_v31  ;;  %v3482_v40 = vld [vmem:[%s3362_s7 + $0x60] sm:$0xff]  ;;  %v3485_v41 = vld [vmem:[%s3362_s7 + $0x68] sm:$0xff]  ;;  %v3512_v56 = vld [vmem:[%s3362_s7 + $0x70] sm:$0xff] }
  0x62   : > { %v1881_v22 = vadd.f32 %v1880_v18, %v1879_v13  ;;  %2697 = vmatpush3.bf16.xpose.msk.msra.mxu0 %vm3401_vm2, %v2692_v9  ;;  %421 = vrot.lane.b32.xlu1 %v3391_v1, %s3181_s24  ;;  %v1886_v32 = vsel %vm581_vm1, %v1819_v20, 0.0  ;;  %v2722_v34 = vpack.c.bf16 %v3446_v26, %v3443_v25  ;;  %v2704_v37 = vpack.c.bf16 %v3439_v23, %v3423_v16  ;;  %v3515_v57 = vld [vmem:[%s3362_s7 + $0x78] sm:$0xff]  ;;  %v3530_v3 = vld [vmem:[%s3362_s7 + $0x80] sm:$0xff]  ;;  %v3533_v4 = vld [vmem:[%s3362_s7 + $0x88] sm:$0xff] }
  0x63   : > { %2700 = vmatprep.subr.msk.bf16.mxu0 %vm3401_vm2, %v2698_v14  ;;  %2718 = vmatprep.subr.msk.bf16.mxu1 %vm3401_vm2, %v2716_v24  ;;  %v1888_v38 = vsel %vm581_vm1, %v1820_v28, 0.0  ;;  %v1822_v39 = vmul.f32 %v3472_v36, %v3472_v36  ;;  %v1823_v43 = vmul.f32 %v525_v17, %v525_v17  ;;  %v1890_v44 = vsel %vm581_vm1, %v1821_v33, 0.0  ;;  %v3547_v12 = vld [vmem:[%s309_s8] sm:$0xff]  ;;  %v3558_v18 = vld [vmem:[%s3362_s7 + $0xc8] sm:$0xff] }
  0x64   : > { %v1883_v30 = vadd.f32 %v1882_v19, %v1881_v22  ;;  %2721 = vmatpush3.bf16.xpose.msk.msra.mxu1 %vm3401_vm2, %v2716_v24  ;;  %v2728_v46 = vpack.c.bf16 %v3485_v41, %v3482_v40  ;;  %v1825_v51 = vmul.f32 %v3443_v25, %v3443_v25  ;;  %v1896_v53 = vsel %vm581_vm1, %v1824_v47, 0.0  ;;  %v3555_v17 = vld [vmem:[%s3362_s7 + $0xc0] sm:$0xff]  ;;  %v3596_v47 = vld [vmem:[%s3362_s7 + $0xd0] sm:$0xff] }
  0x65   : > { %2724 = vmatprep.subr.msk.bf16.mxu1 %vm3401_vm2, %v2722_v34  ;;  %v1892_v48 = vsel %vm581_vm1, %v1822_v39, 0.0  ;;  %v1894_v50 = vsel %vm581_vm1, %v1823_v43, 0.0  ;;  %v2710_v54 = vpack.c.bf16 %v3472_v36, %v3460_v31  ;;  %v1826_v55 = vmul.f32 %v3446_v26, %v3446_v26 }
  0x66   : > { %v1885_v35 = vadd.f32 %v1884_v27, %v1883_v30  ;;  %442 = vrot.lane.b32.xlu1 %v3457_v29, %s3179_s3  ;;  %v1898_v59 = vsel %vm581_vm1, %v1825_v51, 0.0  ;;  %v1827_v60 = vmul.f32 %v3482_v40, %v3482_v40  ;;  %v2734_v62 = vpack.c.bf16 %v3515_v57, %v3512_v56 }
  0x67   : > { %v1900_v63 = vsel %vm581_vm1, %v1826_v55, 0.0  ;;  %v1828_v0 = vmul.f32 %v3485_v41, %v3485_v41  ;;  %v1829_v9 = vmul.f32 %v3512_v56, %v3512_v56  ;;  %v1830_v15 = vmul.f32 %v3515_v57, %v3515_v57 }
  0x68   : > { %v1887_v42 = vadd.f32 %v1886_v32, %v1885_v35  ;;  %v1902_v7 = vsel %vm581_vm1, %v1827_v60, 0.0  ;;  %v1831_v20 = vmul.f32 %v3530_v3, %v3530_v3  ;;  %v342_v24 = vsel %vm341_vm3, %v3547_v12, -inf  ;;  %v3578_v35 = vld [vmem:[%s3362_s7 + $0x98] sm:$0xff] }
  0x69   : > { %v1904_v13 = vsel %vm581_vm1, %v1828_v0, 0.0  ;;  %v1906_v22 = vsel %vm581_vm1, %v1829_v9, 0.0  ;;  %v2764_v28 = vpack.c.bf16 %v3558_v18, %v3555_v17  ;;  %v1832_v30 = vmul.f32 %v3533_v4, %v3533_v4 }
  0x6a   : > { %2703 = vmatpush3.bf16.xpose.msk.msra.mxu0 %vm3401_vm2, %v2698_v14  ;;  %v1889_v45 = vadd.f32 %v1888_v38, %v1887_v42  ;;  %v2740_v14 = vpack.c.bf16 %v3533_v4, %v3530_v3  ;;  %v1908_v32 = vsel %vm581_vm1, %v1830_v15, 0.0  ;;  %v1839_v0 = vmul.f32 %v3555_v17, %v3555_v17  ;;  %v3693_v15 = vld [vmem:[%s3362_s7 + $0xf0] sm:$0xff] }
  0x6b   : > { %2706 = vmatprep.subr.msk.bf16.mxu0 %vm3401_vm2, %v2704_v37  ;;  %v1912_v42 = vsel %vm581_vm1, %v1832_v30, 0.0  ;;  %v3715_v30 = vld [vmem:[%s3362_s7 + $0x100] sm:$0xff]  ;;  %v386_v6 = vsel %vm385_vm5, %v3457_v29, 0.0  ;;  %vm381_vm8 = vcmask 0  }
  0x6c   : > { %v1891_v49 = vadd.f32 %v1890_v44, %v1889_v45  ;;  %2727 = vmatpush3.bf16.xpose.msk.msra.mxu1 %vm3401_vm2, %v2722_v34  ;;  %v3575_v34 = vld [vmem:[%s3362_s7 + $0x90] sm:$0xff]  ;;  %v1834_v44 = vmul.f32 %v3578_v35, %v3578_v35 }
  0x6d   : > { %2730 = vmatprep.subr.msk.bf16.mxu1 %vm3401_vm2, %v2728_v46  ;;  %v1833_v38 = vmul.f32 %v3575_v34, %v3575_v34  ;;  %v2746_v43 = vpack.c.bf16 %v3578_v35, %v3575_v34 }
  0x6e   : > { %v1893_v52 = vadd.f32 %v1892_v48, %v1891_v49  ;;  %v3599_v48 = vld [vmem:[%s3362_s7 + $0xd8] sm:$0xff] }
  0x6f   : > { %v1914_v49 = vsel %vm581_vm1, %v1833_v38, 0.0 }
  0x70   : > { %v1895_v58 = vadd.f32 %v1894_v50, %v1893_v52  ;;  %v3611_v52 = vld [vmem:[%s3362_s7 + $0xa8] sm:$0xff] }
  0x72   : > { %v1897_v61 = vadd.f32 %v1896_v53, %v1895_v58  ;;  %2709 = vmatpush3.bf16.xpose.msk.msra.mxu0 %vm3401_vm2, %v2704_v37  ;;  %v1910_v37 = vsel %vm581_vm1, %v1831_v20, 0.0  ;;  %v1836_v53 = vmul.f32 %v3611_v52, %v3611_v52 }
  0x73   : > { %2712 = vmatprep.subr.msk.bf16.mxu0 %vm3401_vm2, %v2710_v54 }
  0x74   : > { %v1899_v2 = vadd.f32 %v1898_v59, %v1897_v61  ;;  %2733 = vmatpush3.bf16.xpose.msk.msra.mxu1 %vm3401_vm2, %v2728_v46  ;;  %v3593_v46 = vld [vmem:[%s3362_s7 + $0xa0] sm:$0xff]  ;;  %v1920_v61 = vsel %vm581_vm1, %v1836_v53, 0.0 }
  0x75   : > { %2736 = vmatprep.subr.msk.bf16.mxu1 %vm3401_vm2, %v2734_v62  ;;  %v1835_v50 = vmul.f32 %v3593_v46, %v3593_v46 }
  0x76   : > { %v1901_v10 = vadd.f32 %v1900_v63, %v1899_v2 }
  0x77   : > { %v1918_v58 = vsel %vm581_vm1, %v1835_v50, 0.0 }
  0x78   : > { %v1903_v19 = vadd.f32 %v1902_v7, %v1901_v10  ;;  %v1841_v10 = vmul.f32 %v3596_v47, %v3596_v47 }
  0x7a   : > { %2715 = vmatpush3.bf16.xpose.msk.msra.mxu0 %vm3401_vm2, %v2710_v54  ;;  %v1905_v27 = vadd.f32 %v1904_v13, %v1903_v19  ;;  %v2770_v54 = vpack.c.bf16 %v3599_v48, %v3596_v47  ;;  %v3696_v19 = vld [vmem:[%s3362_s7 + $0xf8] sm:$0xff] }
  0x7b   : > { %2742 = vmatprep.subr.msk.bf16.mxu0 %vm3401_vm2, %v2740_v14 }
  0x7c   : > { %v1907_v33 = vadd.f32 %v1906_v22, %v1905_v27  ;;  %343 = vmax.xlane.f32.xlu0 %v342_v24  ;;  %2739 = vmatpush3.bf16.xpose.msk.msra.mxu1 %vm3401_vm2, %v2734_v62  ;;  %v2782_v24 = vpack.c.bf16 %v3696_v19, %v3693_v15 }
  0x7d   : > { %2766 = vmatprep.subr.msk.bf16.mxu1 %vm3401_vm2, %v2764_v28 }
  0x7e   : > { %v1909_v39 = vadd.f32 %v1908_v32, %v1907_v33  ;;  %v1845_v33 = vmul.f32 %v3693_v15, %v3693_v15 }
  0x80   : > { %v1911_v45 = vadd.f32 %v1910_v37, %v1909_v39  ;;  %v1938_v50 = vsel %vm581_vm1, %v1845_v33, 0.0  ;;  %v3865_v33 = vld [vmem:[%s3362_s7 + $0x178] sm:$0xff] }
  0x81   : > { %2485 = vmatmul.mubr.msk.f32.vlgmr.msra.gmra.mrb[0].mxu0 %vm581_vm1, %v3397_v5  ;;  %v1916_v5 = vsel %vm581_vm1, %v1834_v44, 0.0  ;;  %v3736_v44 = vld [vmem:[%s3362_s7 + $0x148] sm:$0xff] }
  0x82   : > { %2745 = vmatpush3.bf16.xpose.msk.msra.mxu0 %vm3401_vm2, %v2740_v14  ;;  %2487 = vmatprep.mubr.msk.f32.mxu0 %vm581_vm1, %v3406_v8  ;;  %v1913_v51 = vadd.f32 %v1912_v42, %v1911_v45  ;;  %v3623_v8 = vld [vmem:[%s3362_s7 + $0xb0] sm:$0xff]  ;;  %v1842_v14 = vmul.f32 %v3599_v48, %v3599_v48  ;;  %v1846_v42 = vmul.f32 %v3696_v19, %v3696_v19 }
  0x83   : > { %2748 = vmatprep.subr.msk.bf16.mxu0 %vm3401_vm2, %v2746_v43  ;;  %2513 = vmatmul.mubr.msk.f32.vlgmr.msra.gmra.mrb[0].mxu1 %vm581_vm1, %v3433_v21  ;;  %v1837_v59 = vmul.f32 %v3623_v8, %v3623_v8  ;;  %v3637_v21 = vld [vmem:[%s3362_s7 + $0xb8] sm:$0xff] }
  0x84   : > { %v1915_v55 = vadd.f32 %v1914_v49, %v1913_v51  ;;  %2769 = vmatpush3.bf16.xpose.msk.msra.mxu1 %vm3401_vm2, %v2764_v28  ;;  %2515 = vmatprep.mubr.msk.f32.mxu1 %vm581_vm1, %v3443_v25  ;;  %v1838_v62 = vmul.f32 %v3637_v21, %v3637_v21  ;;  %v3652_v25 = vld [vmem:[%s3362_s7 + $0xe8] sm:$0xff]  ;;  %v1847_v49 = vmul.f32 %v3715_v30, %v3715_v30 }
  0x85   : > { %2488 = vmatmul.mubr.msk.f32.gmra.mrb[2].mxu0 %vm581_vm1, %v3412_v11  ;;  %v2752_v11 = vpack.c.bf16 %v3611_v52, %v3593_v46  ;;  %2772 = vmatprep.subr.msk.bf16.mxu1 %vm3401_vm2, %v2770_v54  ;;  %v1922_v2 = vsel %vm581_vm1, %v1837_v59, 0.0  ;;  %v1844_v27 = vmul.f32 %v3652_v25, %v3652_v25  ;;  %v3754_v59 = vld [vmem:[%s3362_s7 + $0x118] sm:$0xff] }
  0x86   : > { %2490 = vmatprep.mubr.msk.f32.mxu0 %vm581_vm1, %v3423_v16  ;;  %v1917_v60 = vadd.f32 %v1916_v5, %v1915_v55  ;;  %v3649_v16 = vld [vmem:[%s3362_s7 + $0xe0] sm:$0xff]  ;;  %v1924_v7 = vsel %vm581_vm1, %v1838_v62, 0.0 }
  0x87   : > { %2516 = vmatmul.mubr.msk.f32.gmra.mrb[2].mxu1 %vm581_vm1, %v3446_v26  ;;  %v1843_v20 = vmul.f32 %v3649_v16, %v3649_v16  ;;  %v1936_v38 = vsel %vm581_vm1, %v1844_v27, 0.0 }
  0x88   : > { %v1919_v63 = vadd.f32 %v1918_v58, %v1917_v60  ;;  %2518 = vmatprep.mubr.msk.f32.mxu1 %vm581_vm1, %v3482_v40  ;;  %v2776_v40 = vpack.c.bf16 %v3652_v25, %v3649_v16  ;;  %v3751_v58 = vld [vmem:[%s3362_s7 + $0x110] sm:$0xff]  ;;  %v1942_v60 = vsel %vm581_vm1, %v1847_v49, 0.0  ;;  %v3907_v49 = vld [vmem:[%s3362_s7 + $0x198] sm:$0xff] }
  0x89   : > { %2491 = vmatmul.mubr.msk.f32.gmra.mrb[4].mxu0 %vm581_vm1, %v3439_v23  ;;  %v1840_v23 = vmul.f32 %v3558_v18, %v3558_v18  ;;  %v1934_v32 = vsel %vm581_vm1, %v1843_v20, 0.0 }
  0x8a   : > { %2751 = vmatpush3.bf16.xpose.msk.msra.mxu0 %vm3401_vm2, %v2746_v43  ;;  %2493 = vmatprep.mubr.msk.f32.mxu0 %vm581_vm1, %v3460_v31  ;;  %v1921_v26 = vadd.f32 %v1920_v61, %v1919_v63  ;;  %v1926_v31 = vsel %vm581_vm1, %v1839_v0, 0.0  ;;  %v3733_v43 = vld [vmem:[%s3362_s7 + $0x140] sm:$0xff]  ;;  %v2794_v63 = vpack.c.bf16 %v3754_v59, %v3751_v58  ;;  %v1850_v0 = vmul.f32 %v3754_v59, %v3754_v59 }
  0x8b   : > { %2754 = vmatprep.subr.msk.bf16.mxu0 %vm3401_vm2, %v2752_v11  ;;  %2519 = vmatmul.mubr.msk.f32.gmra.mrb[4].mxu1 %vm581_vm1, %v3485_v41  ;;  %v1928_v41 = vsel %vm581_vm1, %v1840_v23, 0.0  ;;  %v2812_v5 = vpack.c.bf16 %v3736_v44, %v3733_v43  ;;  %v3772_v23 = vld [vmem:[%s3362_s7 + $0x150] sm:$0xff] }
  0x8c   : > { %v1923_v9 = vadd.f32 %v1922_v2, %v1921_v26  ;;  %2775 = vmatpush3.bf16.xpose.msk.msra.mxu1 %vm3401_vm2, %v2770_v54  ;;  %2521 = vmatprep.mubr.msk.f32.mxu1 %vm581_vm1, %v3512_v56  ;;  %v1940_v54 = vsel %vm581_vm1, %v1846_v42, 0.0  ;;  %v3769_v26 = vld [vmem:[%s3362_s7 + $0x120] sm:$0xff]  ;;  %v3895_v42 = vld [vmem:[%s3362_s7 + $0x1c8] sm:$0xff] }
  0x8d   : > { %2494 = vmatmul.mubr.msk.f32.gmra.mrb[6].mxu0 %vm581_vm1, %v3472_v36  ;;  %v2758_v36 = vpack.c.bf16 %v3637_v21, %v3623_v8  ;;  %2778 = vmatprep.subr.msk.bf16.mxu1 %vm3401_vm2, %v2776_v40 }
  0x8e   : > { %v1925_v13 = vadd.f32 %v1924_v7, %v1923_v9  ;;  %2540 = vmatprep.mubr.msk.f32.mxu0 %vm581_vm1, %v3530_v3  ;;  %v1930_v3 = vsel %vm581_vm1, %v1841_v10, 0.0  ;;  %v3775_v7 = vld [vmem:[%s3362_s7 + $0x158] sm:$0xff]  ;;  %v1851_v9 = vmul.f32 %v3769_v26, %v3769_v26  ;;  %v3787_v10 = vld [vmem:[%s3362_s7 + $0x128] sm:$0xff] }
  0x8f   : > { %2522 = vmatmul.mubr.msk.f32.gmra.mrb[6].mxu1 %vm581_vm1, %v3515_v57  ;;  %v1932_v57 = vsel %vm581_vm1, %v1842_v14, 0.0 }
  0x90   : > { %v1927_v56 = vadd.f32 %v1926_v31, %v1925_v13  ;;  %2568 = vmatprep.mubr.msk.f32.mxu1 %vm581_vm1, %v3555_v17  ;;  %v3718_v17 = vld [vmem:[%s3362_s7 + $0x108] sm:$0xff]  ;;  %v1852_v13 = vmul.f32 %v3787_v10, %v3787_v10  ;;  %v1950_v14 = vsel %vm581_vm1, %v1851_v9, 0.0  ;;  %v354_v9 = vlaneseq }
  0x91   : > { %v2788_v39 = vpack.c.bf16 %v3718_v17, %v3715_v30  ;;  %v1848_v53 = vmul.f32 %v3718_v17, %v3718_v17 }
  0x92   : > { %2757 = vmatpush3.bf16.xpose.msk.msra.mxu0 %vm3401_vm2, %v2752_v11  ;;  %v1929_v22 = vadd.f32 %v1928_v41, %v1927_v56  ;;  %v1849_v11 = vmul.f32 %v3751_v58, %v3751_v58  ;;  %v2818_v41 = vpack.c.bf16 %v3775_v7, %v3772_v23  ;;  %v1952_v20 = vsel %vm581_vm1, %v1852_v13, 0.0 }
  0x93   : > { %2760 = vmatprep.subr.msk.bf16.mxu0 %vm3401_vm2, %v2758_v36  ;;  %v1944_v62 = vsel %vm581_vm1, %v1848_v53, 0.0 }
  0x94   : > { %v1931_v28 = vadd.f32 %v1930_v3, %v1929_v22  ;;  %2781 = vmatpush3.bf16.xpose.msk.msra.mxu1 %vm3401_vm2, %v2776_v40  ;;  %v1946_v40 = vsel %vm581_vm1, %v1849_v11, 0.0  ;;  %v3974_v11 = vld [vmem:[%s3362_s7 + $0x1b0] sm:$0xff] }
  0x95   : > { %2784 = vmatprep.subr.msk.bf16.mxu1 %vm3401_vm2, %v2782_v24 }
  0x96   : > { %v1933_v37 = vadd.f32 %v1932_v57, %v1931_v28  ;;  %v1855_v57 = vmul.f32 %v3733_v43, %v3733_v43 }
  0x98   : > { %v1935_v45 = vadd.f32 %v1934_v32, %v1933_v37 }
  0x9a   : > { %2763 = vmatpush3.bf16.xpose.msk.msra.mxu0 %vm3401_vm2, %v2758_v36  ;;  %v1937_v51 = vadd.f32 %v1936_v38, %v1935_v45  ;;  %v3883_v38 = vld [vmem:[%s3362_s7 + $0x188] sm:$0xff]  ;;  %v3904_v45 = vld [vmem:[%s3362_s7 + $0x190] sm:$0xff] }
  0x9b   : > { %2790 = vmatprep.subr.msk.bf16.mxu0 %vm3401_vm2, %v2788_v39 }
  0x9c   : > { %v1939_v55 = vadd.f32 %v1938_v50, %v1937_v51  ;;  %2787 = vmatpush3.bf16.xpose.msk.msra.mxu1 %vm3401_vm2, %v2782_v24  ;;  %v2842_v50 = vpack.c.bf16 %v3907_v49, %v3904_v45  ;;  %v3916_v51 = vld [vmem:[%s3362_s7 + $0x1d0] sm:$0xff] }
  0x9d   : > { %2814 = vmatprep.subr.msk.bf16.mxu1 %vm3401_vm2, %v2812_v5 }
  0x9e   : > { %v1941_v61 = vadd.f32 %v1940_v54, %v1939_v55  ;;  %v3934_v54 = vld [vmem:[%s3362_s7 + $0x1a0] sm:$0xff]  ;;  %v3937_v55 = vld [vmem:[%s3362_s7 + $0x1a8] sm:$0xff] }
  0xa0   : > { %v1943_v2 = vadd.f32 %v1942_v60, %v1941_v61  ;;  %v3977_v61 = vld [vmem:[%s3362_s7 + $0x1b8] sm:$0xff] }
  0xa1   : > { %2541 = vmatmul.mubr.msk.f32.vlgmr.msra.gmra.mrb[8].mxu0 %vm581_vm1, %v3533_v4  ;;  %v1948_v4 = vsel %vm581_vm1, %v1850_v0, 0.0  ;;  %v3995_v0 = vld [vmem:[%s3362_s7 + $0x1f8] sm:$0xff] }
  0xa2   : > { %2793 = vmatpush3.bf16.xpose.msk.msra.mxu0 %vm3401_vm2, %v2788_v39  ;;  %2543 = vmatprep.mubr.msk.f32.mxu0 %vm581_vm1, %v3575_v34  ;;  %v1945_v31 = vadd.f32 %v1944_v62, %v1943_v2  ;;  %v3799_v34 = vld [vmem:[%s3362_s7 + $0x130] sm:$0xff]  ;;  %v3892_v39 = vld [vmem:[%s3362_s7 + $0x1c0] sm:$0xff]  ;;  %v2854_v62 = vpack.c.bf16 %v3977_v61, %v3974_v11 }
  0xa3   : > { %2796 = vmatprep.subr.msk.bf16.mxu0 %vm3401_vm2, %v2794_v63  ;;  %2569 = vmatmul.mubr.msk.f32.vlgmr.msra.gmra.mrb[8].mxu1 %vm581_vm1, %v3558_v18  ;;  %v1853_v56 = vmul.f32 %v3799_v34, %v3799_v34  ;;  %v3813_v18 = vld [vmem:[%s3362_s7 + $0x138] sm:$0xff] }
  0xa4   : > { %v1947_v36 = vadd.f32 %v1946_v40, %v1945_v31  ;;  %2817 = vmatpush3.bf16.xpose.msk.msra.mxu1 %vm3401_vm2, %v2812_v5  ;;  %2571 = vmatprep.mubr.msk.f32.mxu1 %vm581_vm1, %v3596_v47  ;;  %v1854_v22 = vmul.f32 %v3813_v18, %v3813_v18  ;;  %v3828_v47 = vld [vmem:[%s3362_s7 + $0x168] sm:$0xff]  ;;  %v3919_v5 = vld [vmem:[%s3362_s7 + $0x1d8] sm:$0xff]  ;;  %v355_v31 = vand.u32 127, %v354_v9 }
  0xa5   : > { %2544 = vmatmul.mubr.msk.f32.gmra.mrb[10].mxu0 %vm581_vm1, %v3578_v35  ;;  %v2800_v35 = vpack.c.bf16 %v3787_v10, %v3769_v26  ;;  %2820 = vmatprep.subr.msk.bf16.mxu1 %vm3401_vm2, %v2818_v41  ;;  %v1954_v27 = vsel %vm581_vm1, %v1853_v56, 0.0  ;;  %v2866_v53 = vpack.c.bf16 %v3919_v5, %v3916_v51 }
  0xa6   : > { %2546 = vmatprep.mubr.msk.f32.mxu0 %vm581_vm1, %v3593_v46  ;;  %v1949_v3 = vadd.f32 %v1948_v4, %v1947_v36  ;;  %v3825_v46 = vld [vmem:[%s3362_s7 + $0x160] sm:$0xff]  ;;  %v3182_v4 = vmov 0.0  }
  0xa7   : > { %2572 = vmatmul.mubr.msk.f32.gmra.mrb[10].mxu1 %vm581_vm1, %v3599_v48  ;;  %v2824_v28 = vpack.c.bf16 %v3828_v47, %v3825_v46 }
  0xa8   : > { %v1951_v24 = vadd.f32 %v1950_v14, %v1949_v3  ;;  %2574 = vmatprep.mubr.msk.f32.mxu1 %vm581_vm1, %v3649_v16 }
  0xa9   : > { %2547 = vmatmul.mubr.msk.f32.gmra.mrb[12].mxu0 %vm581_vm1, %v3611_v52  ;;  %v1956_v52 = vsel %vm581_vm1, %v1854_v22, 0.0 }
  0xaa   : > { %2799 = vmatpush3.bf16.xpose.msk.msra.mxu0 %vm3401_vm2, %v2794_v63  ;;  %2549 = vmatprep.mubr.msk.f32.mxu0 %vm581_vm1, %v3623_v8  ;;  %v1953_v48 = vadd.f32 %v1952_v20, %v1951_v24  ;;  %v1958_v8 = vsel %vm581_vm1, %v1855_v57, 0.0  ;;  %v3992_v63 = vld [vmem:[%s3362_s7 + $0x1f0] sm:$0xff] }
  0xab   : > { %2802 = vmatprep.subr.msk.bf16.mxu0 %vm3401_vm2, %v2800_v35  ;;  %2575 = vmatmul.mubr.msk.f32.gmra.mrb[12].mxu1 %vm581_vm1, %v3652_v25  ;;  %v2806_v25 = vpack.c.bf16 %v3813_v18, %v3799_v34  ;;  %v2878_v40 = vpack.c.bf16 %v3995_v0, %v3992_v63 }
  0xac   : > { %v1955_v16 = vadd.f32 %v1954_v27, %v1953_v48  ;;  %2823 = vmatpush3.bf16.xpose.msk.msra.mxu1 %vm3401_vm2, %v2818_v41  ;;  %2577 = vmatprep.mubr.msk.f32.mxu1 %vm581_vm1, %v3693_v15 }
  0xad   : > { %2550 = vmatmul.mubr.msk.f32.gmra.mrb[14].mxu0 %vm581_vm1, %v3637_v21  ;;  %2826 = vmatprep.subr.msk.bf16.mxu1 %vm3401_vm2, %v2824_v28  ;;  %v3862_v21 = vld [vmem:[%s3362_s7 + $0x170] sm:$0xff] }
  0xae   : > { %v1957_v32 = vadd.f32 %v1956_v52, %v1955_v16  ;;  %2596 = vmatprep.mubr.msk.f32.mxu0 %vm581_vm1, %v3715_v30  ;;  %v2830_v15 = vpack.c.bf16 %v3865_v33, %v3862_v21  ;;  %v3880_v30 = vld [vmem:[%s3362_s7 + $0x180] sm:$0xff] }
  0xaf   : > { %2578 = vmatmul.mubr.msk.f32.gmra.mrb[14].mxu1 %vm581_vm1, %v3696_v19  ;;  %v2836_v19 = vpack.c.bf16 %v3883_v38, %v3880_v30 }
  0xb0   : > { %v3867_v37 = vadd.f32 %v1958_v8, %v1957_v32  ;;  %2624 = vmatprep.mubr.msk.f32.mxu1 %vm581_vm1, %v3733_v43  ;;  %v2860_v43 = vpack.c.bf16 %v3895_v42, %v3892_v39 }
  0xb2   : > { %2805 = vmatpush3.bf16.xpose.msk.msra.mxu0 %vm3401_vm2, %v2800_v35 }
  0xb3   : > { %2808 = vmatprep.subr.msk.bf16.mxu0 %vm3401_vm2, %v2806_v25 }
  0xb4   : > { %2829 = vmatpush3.bf16.xpose.msk.msra.mxu1 %vm3401_vm2, %v2824_v28 }
  0xb5   : > { %2832 = vmatprep.subr.msk.bf16.mxu1 %vm3401_vm2, %v2830_v15 }
  0xba   : > { %2811 = vmatpush3.bf16.xpose.msk.msra.mxu0 %vm3401_vm2, %v2806_v25 }
  0xbb   : > { %2838 = vmatprep.subr.msk.bf16.mxu0 %vm3401_vm2, %v2836_v19 }
  0xbc   : > { %2835 = vmatpush3.bf16.xpose.msk.msra.mxu1 %vm3401_vm2, %v2830_v15 }
  0xbd   : > { %2862 = vmatprep.subr.msk.bf16.mxu1 %vm3401_vm2, %v2860_v43 }
  0xc1   : > { %2597 = vmatmul.mubr.msk.f32.vlgmr.msra.gmra.mrb[16].mxu0 %vm581_vm1, %v3718_v17  ;;  %v2848_v17 = vpack.c.bf16 %v3937_v55, %v3934_v54 }
  0xc2   : > { %2841 = vmatpush3.bf16.xpose.msk.msra.mxu0 %vm3401_vm2, %v2836_v19  ;;  %2599 = vmatprep.mubr.msk.f32.mxu0 %vm581_vm1, %v3751_v58  ;;  %v3954_v58 = vld [vmem:[%s3362_s7 + $0x1e0] sm:$0xff] }
  0xc3   : > { %2844 = vmatprep.subr.msk.bf16.mxu0 %vm3401_vm2, %v2842_v50  ;;  %2625 = vmatmul.mubr.msk.f32.vlgmr.msra.gmra.mrb[16].mxu1 %vm581_vm1, %v3736_v44 }
  0xc4   : > { %2865 = vmatpush3.bf16.xpose.msk.msra.mxu1 %vm3401_vm2, %v2860_v43  ;;  %2627 = vmatprep.mubr.msk.f32.mxu1 %vm581_vm1, %v3772_v23 }
  0xc5   : > { %2600 = vmatmul.mubr.msk.f32.gmra.mrb[18].mxu0 %vm581_vm1, %v3754_v59  ;;  %2868 = vmatprep.subr.msk.bf16.mxu1 %vm3401_vm2, %v2866_v53  ;;  %v3957_v59 = vld [vmem:[%s3362_s7 + $0x1e8] sm:$0xff] }
  0xc6   : > { %2602 = vmatprep.mubr.msk.f32.mxu0 %vm581_vm1, %v3769_v26  ;;  %v2872_v60 = vpack.c.bf16 %v3957_v59, %v3954_v58 }
  0xc7   : > { %2628 = vmatmul.mubr.msk.f32.gmra.mrb[18].mxu1 %vm581_vm1, %v3775_v7 }
  0xc8   : > { %2630 = vmatprep.mubr.msk.f32.mxu1 %vm581_vm1, %v3825_v46 }
  0xc9   : > { %2603 = vmatmul.mubr.msk.f32.gmra.mrb[20].mxu0 %vm581_vm1, %v3787_v10 }
  0xca   : > { %2847 = vmatpush3.bf16.xpose.msk.msra.mxu0 %vm3401_vm2, %v2842_v50  ;;  %2605 = vmatprep.mubr.msk.f32.mxu0 %vm581_vm1, %v3799_v34 }
  0xcb   : > { %2850 = vmatprep.subr.msk.bf16.mxu0 %vm3401_vm2, %v2848_v17  ;;  %2631 = vmatmul.mubr.msk.f32.gmra.mrb[20].mxu1 %vm581_vm1, %v3828_v47 }
  0xcc   : > { %2871 = vmatpush3.bf16.xpose.msk.msra.mxu1 %vm3401_vm2, %v2866_v53  ;;  %2633 = vmatprep.mubr.msk.f32.mxu1 %vm581_vm1, %v3862_v21 }
  0xcd   : > { %2606 = vmatmul.mubr.msk.f32.gmra.mrb[22].mxu0 %vm581_vm1, %v3813_v18  ;;  %2874 = vmatprep.subr.msk.bf16.mxu1 %vm3401_vm2, %v2872_v60 }
  0xce   : > { %2652 = vmatprep.mubr.msk.f32.mxu0 %vm581_vm1, %v3880_v30 }
  0xcf   : > { %v403_v2 = vpop.permute.xlu0 %402  ;;  %2634 = vmatmul.mubr.msk.f32.gmra.mrb[22].mxu1 %vm581_vm1, %v3865_v33 }
  0xd0   : > { %v405_v26 = vmul.f32 %v403_v2, %v3391_v1  ;;  %2680 = vmatprep.mubr.msk.f32.mxu1 %vm581_vm1, %v3892_v39 }
  0xd2   : > { %2853 = vmatpush3.bf16.xpose.msk.msra.mxu0 %vm3401_vm2, %v2848_v17  ;;  %461 = vrot.lane.b32.xlu1 %v405_v26, %s3179_s3  ;;  %v406_v56 = vsel %vm385_vm5, %v405_v26, 0.0 }
  0xd3   : > { %2856 = vmatprep.subr.msk.bf16.mxu0 %vm3401_vm2, %v2854_v62 }
  0xd4   : > { %2877 = vmatpush3.bf16.xpose.msk.msra.mxu1 %vm3401_vm2, %v2872_v60 }
  0xd5   : > { %2880 = vmatprep.subr.msk.bf16.mxu1 %vm3401_vm2, %v2878_v40 }
  0xd6   : > { %481 = vrot.lane.b32.xlu1 %v3457_v29, %s3181_s24 }
  0xda   : > { %2859 = vmatpush3.bf16.xpose.msk.msra.mxu0 %vm3401_vm2, %v2854_v62 }
  0xdc   : > { %2883 = vmatpush3.bf16.xpose.msk.msra.mxu1 %vm3401_vm2, %v2878_v40 }
  0xdd   : > { %v358_v10 = vpop.permute.xlu1 %357 }
  0xde   : > { %vm359_vm4 = vcmp.eq.s32.totalorder %v355_v31, %v358_v10 }
  0xdf   : > { %v2204_v13 = vsel %vm359_vm4, 1.0, %v3182_v4 }
  0xe0   : > { %v362_v41 = vmul.f32 %v2204_v13, %v3547_v12 }
  0xe1   : > { %2653 = vmatmul.mubr.msk.f32.vlgmr.msra.gmra.mrb[24].mxu0 %vm581_vm1, %v3883_v38  ;;  %v422_v34 = vpop.permute.xlu1 %421 }
  0xe2   : > { %2655 = vmatprep.mubr.msk.f32.mxu0 %vm581_vm1, %v3904_v45  ;;  %v363_v36 = vsel %vm341_vm3, %v362_v41, 0.0  ;;  %v424_v14 = vmul.f32 %v422_v34, %v3391_v1 }
  0xe3   : > { %364 = vadd.xlane.f32.xlu0 %v363_v36  ;;  %2681 = vmatmul.mubr.msk.f32.vlgmr.msra.gmra.mrb[24].mxu1 %vm581_vm1, %v3895_v42 }
  0xe4   : > { %2683 = vmatprep.mubr.msk.f32.mxu1 %vm581_vm1, %v3916_v51  ;;  %v425_v3 = vsel %vm385_vm5, %v424_v14, 0.0 }
  0xe5   : > { %2656 = vmatmul.mubr.msk.f32.gmra.mrb[26].mxu0 %vm581_vm1, %v3907_v49  ;;  %v443_v18 = vpop.permute.xlu1 %442 }
  0xe6   : > { %2658 = vmatprep.mubr.msk.f32.mxu0 %vm581_vm1, %v3934_v54  ;;  %v445_v1 = vsel %vm385_vm5, %v443_v18, 0.0 }
  0xe7   : > { %387 = vadd.xlane.f32.xlu0 %v386_v6  ;;  %2684 = vmatmul.mubr.msk.f32.gmra.mrb[26].mxu1 %vm581_vm1, %v3919_v5 }
  0xe8   : > { %2686 = vmatprep.mubr.msk.f32.mxu1 %vm581_vm1, %v3954_v58 }
  0xe9   : > { %2659 = vmatmul.mubr.msk.f32.gmra.mrb[28].mxu0 %vm581_vm1, %v3937_v55 }
  0xea   : > { %2661 = vmatprep.mubr.msk.f32.mxu0 %vm581_vm1, %v3974_v11 }
  0xeb   : > { %407 = vadd.xlane.f32.xlu0 %v406_v56  ;;  %2687 = vmatmul.mubr.msk.f32.gmra.mrb[28].mxu1 %vm581_vm1, %v3957_v59 }
  0xec   : > { %2689 = vmatprep.mubr.msk.f32.mxu1 %vm581_vm1, %v3992_v63 }
  0xed   : > { %2662 = vmatmul.mubr.msk.f32.gmra.mrb[30].mxu0 %vm581_vm1, %v3977_v61 }
  0xef   : > { %2690 = vmatmul.mubr.msk.f32.gmra.mrb[30].mxu1 %vm581_vm1, %v3995_v0  ;;  %426 = vadd.xlane.f32.xlu0 %v425_v3 }
  0xf3   : > { %446 = vadd.xlane.f32.xlu0 %v445_v1 }
 0x109   : > { %v4056_v35 = vpop.xlane.xlu0 %343 }
 0x10a   : > { %v345_v20 = vsub.f32 %v3547_v12, %v4056_v35 }
 0x10c   : > { %v346_v22 = vmul.f32 1.442695, %v345_v20 }
 0x10e   : > { %3016 = vpow2.f32 %v346_v22 }
 0x118   : > { %v3017_v24 = vpop.eup %3016 }
 0x119   : > { %v348_v57 = vsel %vm341_vm3, %v3017_v24, 0.0 }
 0x11a   : > { %349 = vadd.xlane.f32.xlu1 %v348_v57 }
 0x144   : > { %v462_v27 = vpop.permute.xlu1 %461 }
 0x145   : > { %v464_v48 = vsel %vm385_vm5, %v462_v27, 0.0 }
 0x146   : > { %465 = vadd.xlane.f32.xlu0 %v464_v48 }
 0x148   : > { %v482_v52 = vpop.permute.xlu1 %481 }
 0x149   : > { %v484_v28 = vsel %vm385_vm5, %v482_v52, 0.0 }
 0x14a   : > { %485 = vadd.xlane.f32.xlu1 %v484_v28 }
 0x154   : > { %v2486_v16 = vpop.f32.mrb[0].mxu0 }
 0x155   : > { %v1616_v8 = vmul.f32 %v2486_v16, %v2486_v16  ;;  %v672_v32 = vpop.f32.mrb[1].mxu0 }
 0x156   : > { %v1615_v25 = vmul.f32 %v672_v32, %v672_v32  ;;  %v2514_v15 = vpop.f32.mrb[0].mxu1 }
 0x157   : > { %v1680_v12 = vsel %vm581_vm1, %v1616_v8, 0.0  ;;  %v801_v50 = vpop.f32.mrb[1].mxu1  ;;  %v1624_v16 = vmul.f32 %v2514_v15, %v2514_v15 }
 0x158   : > { %v1679_v19 = vsel %vm581_vm1, %v1615_v25, 0.0  ;;  %v2489_v43 = vpop.f32.mrb[2].mxu0  ;;  %v1623_v57 = vmul.f32 %v801_v50, %v801_v50 }
 0x159   : > { %v1681_v53 = vadd.f32 %v1680_v12, %v1679_v19  ;;  %v1618_v17 = vmul.f32 %v2489_v43, %v2489_v43  ;;  %v682_v60 = vpop.f32.mrb[3].mxu0  ;;  %v1696_v43 = vsel %vm581_vm1, %v1624_v16, 0.0 }
 0x15a   : > { %v1617_v62 = vmul.f32 %v682_v60, %v682_v60  ;;  %v2517_v2 = vpop.f32.mrb[2].mxu1  ;;  %v1694_v25 = vsel %vm581_vm1, %v1623_v57, 0.0 }
 0x15b   : > { %v1684_v26 = vsel %vm581_vm1, %v1618_v17, 0.0  ;;  %v811_v10 = vpop.f32.mrb[3].mxu1 }
 0x15c   : > { %v1682_v40 = vsel %vm581_vm1, %v1617_v62, 0.0  ;;  %v2492_v31 = vpop.f32.mrb[4].mxu0  ;;  %v1625_v12 = vmul.f32 %v811_v10, %v811_v10 }
 0x15d   : > { %v1683_v4 = vadd.f32 %v1682_v40, %v1681_v53  ;;  %v1620_v13 = vmul.f32 %v2492_v31, %v2492_v31  ;;  %v692_v41 = vpop.f32.mrb[5].mxu0  ;;  %v1626_v53 = vmul.f32 %v2517_v2, %v2517_v2 }
 0x15e   : > { %v1619_v36 = vmul.f32 %v692_v41, %v692_v41  ;;  %v2520_v34 = vpop.f32.mrb[4].mxu1  ;;  %v1698_v60 = vsel %vm581_vm1, %v1625_v12, 0.0 }
 0x15f   : > { %v1685_v6 = vadd.f32 %v1684_v26, %v1683_v4  ;;  %v1688_v14 = vsel %vm581_vm1, %v1620_v13, 0.0  ;;  %v821_v18 = vpop.f32.mrb[5].mxu1  ;;  %v1700_v26 = vsel %vm581_vm1, %v1626_v53, 0.0  ;;  %v1628_v40 = vmul.f32 %v2520_v34, %v2520_v34 }
 0x160   : > { %v1686_v56 = vsel %vm581_vm1, %v1619_v36, 0.0  ;;  %v2495_v3 = vpop.f32.mrb[6].mxu0  ;;  %v1627_v50 = vmul.f32 %v821_v18, %v821_v18 }
 0x161   : > { %v1687_v1 = vadd.f32 %v1686_v56, %v1685_v6  ;;  %v1622_v20 = vmul.f32 %v2495_v3, %v2495_v3  ;;  %v702_v22 = vpop.f32.mrb[7].mxu0  ;;  %v1704_v41 = vsel %vm581_vm1, %v1628_v40, 0.0  ;;  %v1856_v40 = vmul.f32 %v3736_v44, %v3736_v44 }
 0x162   : > { %v1621_v24 = vmul.f32 %v702_v22, %v702_v22  ;;  %v2523_v48 = vpop.f32.mrb[6].mxu1  ;;  %v1702_v15 = vsel %vm581_vm1, %v1627_v50, 0.0  ;;  %v1857_v44 = vmul.f32 %v3772_v23, %v3772_v23 }
 0x163   : > { %v1689_v27 = vadd.f32 %v1688_v14, %v1687_v1  ;;  %v1692_v52 = vsel %vm581_vm1, %v1622_v20, 0.0  ;;  %v831_v8 = vpop.f32.mrb[7].mxu1  ;;  %v1630_v10 = vmul.f32 %v2523_v48, %v2523_v48 }
 0x164   : > { %v1690_v28 = vsel %vm581_vm1, %v1621_v24, 0.0  ;;  %v1629_v4 = vmul.f32 %v831_v8, %v831_v8  ;;  %v1962_v23 = vsel %vm581_vm1, %v1857_v44, 0.0 }
 0x165   : > { %v1691_v32 = vadd.f32 %v1690_v28, %v1689_v27  ;;  %v1708_v56 = vsel %vm581_vm1, %v1630_v10, 0.0 }
 0x166   : > { %v1706_v2 = vsel %vm581_vm1, %v1629_v4, 0.0 }
 0x167   : > { %v1693_v19 = vadd.f32 %v1692_v52, %v1691_v32 }
 0x169   : > { %v1695_v17 = vadd.f32 %v1694_v25, %v1693_v19 }
 0x16b   : > { %v1697_v62 = vadd.f32 %v1696_v43, %v1695_v17 }
 0x16d   : > { %v1699_v31 = vadd.f32 %v1698_v60, %v1697_v62 }
 0x16f   : > { %v1701_v13 = vadd.f32 %v1700_v26, %v1699_v31 }
 0x170   : > { %v4077_v6 = vpop.xlane.xlu0 %364 }
 0x171   : > { %v1703_v36 = vadd.f32 %v1702_v15, %v1701_v13 }
 0x173   : > { %v1705_v14 = vadd.f32 %v1704_v41, %v1703_v36 }
 0x174   : > { %v2542_v3 = vpop.f32.mrb[8].mxu0  ;;  %v388_v1 = vpop.xlane.xlu0 %387 }
 0x175   : > { %v1707_v18 = vadd.f32 %v1706_v2, %v1705_v14  ;;  %v1632_v34 = vmul.f32 %v2542_v3, %v2542_v3  ;;  %v930_v20 = vpop.f32.mrb[9].mxu0  ;;  %v389_v22 = vmul.f32 %v388_v1, %v388_v1 }
 0x176   : > { %v1631_v24 = vmul.f32 %v930_v20, %v930_v20  ;;  %v2570_v27 = vpop.f32.mrb[8].mxu1 }
 0x177   : > { %v1709_v57 = vadd.f32 %v1708_v56, %v1707_v18  ;;  %v1712_v48 = vsel %vm581_vm1, %v1632_v34, 0.0  ;;  %v1059_v16 = vpop.f32.mrb[9].mxu1  ;;  %v390_v8 = vsel %vm368_vm6, %v389_v22, 0.0  ;;  %v1960_v34 = vsel %vm581_vm1, %v1856_v40, 0.0 }
 0x178   : > { %v1710_v52 = vsel %vm581_vm1, %v1631_v24, 0.0  ;;  %v2545_v28 = vpop.f32.mrb[10].mxu0  ;;  %v4084_v25 = vpop.xlane.xlu0 %407  ;;  %391 = vadd.xlane.f32.xlu1 %v390_v8  ;;  %v1961_v8 = vadd.f32 %v1960_v34, %v3867_v37 }
 0x179   : > { %v1711_v32 = vadd.f32 %v1710_v52, %v1709_v57  ;;  %v1634_v12 = vmul.f32 %v2545_v28, %v2545_v28  ;;  %v940_v19 = vpop.f32.mrb[11].mxu0 }
 0x17a   : > { %v1633_v43 = vmul.f32 %v940_v19, %v940_v19  ;;  %v2573_v17 = vpop.f32.mrb[10].mxu1  ;;  %v1640_v19 = vmul.f32 %v2570_v27, %v2570_v27  ;;  %v1963_v40 = vadd.f32 %v1962_v23, %v1961_v8  ;;  %v1859_v27 = vmul.f32 %v3825_v46, %v3825_v46 }
 0x17b   : > { %v1713_v53 = vadd.f32 %v1712_v48, %v1711_v32  ;;  %v1716_v60 = vsel %vm581_vm1, %v1634_v12, 0.0  ;;  %v1069_v26 = vpop.f32.mrb[11].mxu1  ;;  %v1639_v48 = vmul.f32 %v1059_v16, %v1059_v16  ;;  %v1642_v37 = vmul.f32 %v2573_v17, %v2573_v17 }
 0x17c   : > { %v1714_v50 = vsel %vm581_vm1, %v1633_v43, 0.0  ;;  %v2548_v62 = vpop.f32.mrb[12].mxu0  ;;  %v427_v13 = vpop.xlane.xlu0 %426  ;;  %v1862_v8 = vmul.f32 %v3865_v33, %v3865_v33 }
 0x17d   : > { %v1715_v31 = vadd.f32 %v1714_v50, %v1713_v53  ;;  %v1636_v15 = vmul.f32 %v2548_v62, %v2548_v62  ;;  %v950_v4 = vpop.f32.mrb[13].mxu0  ;;  %v428_v10 = vmul.f32 %v427_v13, %v427_v13  ;;  %v1858_v53 = vmul.f32 %v3775_v7, %v3775_v7 }
 0x17e   : > { %v1635_v41 = vmul.f32 %v950_v4, %v950_v4  ;;  %v2576_v2 = vpop.f32.mrb[12].mxu1  ;;  %v1726_v50 = vsel %vm581_vm1, %v1639_v48, 0.0  ;;  %v1641_v62 = vmul.f32 %v1069_v26, %v1069_v26  ;;  %v1860_v26 = vmul.f32 %v3828_v47, %v3828_v47 }
 0x17f   : > { %v1717_v36 = vadd.f32 %v1716_v60, %v1715_v31  ;;  %v1720_v14 = vsel %vm581_vm1, %v1636_v15, 0.0  ;;  %v1079_v18 = vpop.f32.mrb[13].mxu1  ;;  %v429_v1 = vsel %vm368_vm6, %v428_v10, 0.0  ;;  %v1728_v31 = vsel %vm581_vm1, %v1640_v19, 0.0 }
 0x180   : > { %v1718_v56 = vsel %vm581_vm1, %v1635_v41, 0.0  ;;  %v2551_v3 = vpop.f32.mrb[14].mxu0  ;;  %430 = vadd.xlane.f32.xlu1 %v429_v1  ;;  %v1964_v15 = vsel %vm581_vm1, %v1858_v53, 0.0  ;;  %v1730_v13 = vsel %vm581_vm1, %v1641_v62, 0.0  ;;  %v1643_v7 = vmul.f32 %v1079_v18, %v1079_v18 }
 0x181   : > { %v1719_v20 = vadd.f32 %v1718_v56, %v1717_v36  ;;  %v1638_v22 = vmul.f32 %v2551_v3, %v2551_v3  ;;  %v960_v24 = vpop.f32.mrb[15].mxu0  ;;  %v1965_v10 = vadd.f32 %v1964_v15, %v1963_v40  ;;  %v1732_v36 = vsel %vm581_vm1, %v1642_v37, 0.0 }
 0x182   : > { %v1637_v57 = vmul.f32 %v960_v24, %v960_v24  ;;  %v2579_v28 = vpop.f32.mrb[14].mxu1  ;;  %v1966_v56 = vsel %vm581_vm1, %v1859_v27, 0.0  ;;  %v1734_v3 = vsel %vm581_vm1, %v1643_v7, 0.0  ;;  %v1968_v18 = vsel %vm581_vm1, %v1860_v26, 0.0 }
 0x183   : > { %v1721_v52 = vadd.f32 %v1720_v14, %v1719_v20  ;;  %v1724_v32 = vsel %vm581_vm1, %v1638_v22, 0.0  ;;  %v1089_v43 = vpop.f32.mrb[15].mxu1  ;;  %v1644_v14 = vmul.f32 %v2576_v2, %v2576_v2  ;;  %v1967_v46 = vadd.f32 %v1966_v56, %v1965_v10 }
 0x184   : > { %v1722_v12 = vsel %vm581_vm1, %v1637_v57, 0.0  ;;  %v1645_v1 = vmul.f32 %v1089_v43, %v1089_v43  ;;  %v1646_v20 = vmul.f32 %v2579_v28, %v2579_v28  ;;  %v1861_v22 = vmul.f32 %v3862_v21, %v3862_v21 }
 0x185   : > { %v1723_v60 = vadd.f32 %v1722_v12, %v1721_v52  ;;  %v1736_v44 = vsel %vm581_vm1, %v1644_v14, 0.0  ;;  %v1969_v57 = vadd.f32 %v1968_v18, %v1967_v46  ;;  %v1863_v40 = vmul.f32 %v3880_v30, %v3880_v30 }
 0x186   : > { %v1738_v24 = vsel %vm581_vm1, %v1645_v1, 0.0  ;;  %v1740_v48 = vsel %vm581_vm1, %v1646_v20, 0.0  ;;  %v1972_v33 = vsel %vm581_vm1, %v1862_v8, 0.0  ;;  %v1864_v26 = vmul.f32 %v3883_v38, %v3883_v38 }
 0x187   : > { %v1725_v16 = vadd.f32 %v1724_v32, %v1723_v60  ;;  %v1970_v32 = vsel %vm581_vm1, %v1861_v22, 0.0  ;;  %v1974_v30 = vsel %vm581_vm1, %v1863_v40, 0.0  ;;  %v1865_v38 = vmul.f32 %v3904_v45, %v3904_v45 }
 0x188   : > { %v1971_v21 = vadd.f32 %v1970_v32, %v1969_v57 }
 0x189   : > { %v1727_v4 = vadd.f32 %v1726_v50, %v1725_v16 }
 0x18a   : > { %v1973_v7 = vadd.f32 %v1972_v33, %v1971_v21 }
 0x18b   : > { %v1729_v41 = vadd.f32 %v1728_v31, %v1727_v4 }
 0x18d   : > { %v1731_v17 = vadd.f32 %v1730_v13, %v1729_v41 }
 0x18f   : > { %v1733_v34 = vadd.f32 %v1732_v36, %v1731_v17 }
 0x191   : > { %v1735_v2 = vadd.f32 %v1734_v3, %v1733_v34 }
 0x193   : > { %v1737_v47 = vadd.f32 %v1736_v44, %v1735_v2  ;;  %v1975_v44 = vadd.f32 %v1974_v30, %v1973_v7 }
 0x194   : > { %v2598_v52 = vpop.f32.mrb[16].mxu0 }
 0x195   : > { %v1739_v12 = vadd.f32 %v1738_v24, %v1737_v47  ;;  %v1648_v28 = vmul.f32 %v2598_v52, %v2598_v52  ;;  %v1188_v19 = vpop.f32.mrb[17].mxu0  ;;  %v1976_v24 = vsel %vm581_vm1, %v1864_v26, 0.0  ;;  %v1868_v26 = vmul.f32 %v3937_v55, %v3937_v55 }
 0x196   : > { %v1647_v43 = vmul.f32 %v1188_v19, %v1188_v19  ;;  %v2626_v23 = vpop.f32.mrb[16].mxu1 }
 0x197   : > { %v1741_v53 = vadd.f32 %v1740_v48, %v1739_v12  ;;  %v1744_v60 = vsel %vm581_vm1, %v1648_v28, 0.0  ;;  %v1317_v16 = vpop.f32.mrb[17].mxu1  ;;  %v1977_v28 = vadd.f32 %v1976_v24, %v1975_v44  ;;  %v1984_v44 = vsel %vm581_vm1, %v1868_v26, 0.0 }
 0x198   : > { %v1742_v50 = vsel %vm581_vm1, %v1647_v43, 0.0  ;;  %v2601_v62 = vpop.f32.mrb[18].mxu0  ;;  %v1655_v8 = vmul.f32 %v1317_v16, %v1317_v16 }
 0x199   : > { %v1743_v31 = vadd.f32 %v1742_v50, %v1741_v53  ;;  %v1650_v37 = vmul.f32 %v2601_v62, %v2601_v62  ;;  %v1198_v15 = vpop.f32.mrb[19].mxu0  ;;  %v1656_v53 = vmul.f32 %v2626_v23, %v2626_v23  ;;  %v1978_v50 = vsel %vm581_vm1, %v1865_v38, 0.0 }
 0x19a   : > { %v1649_v27 = vmul.f32 %v1198_v15, %v1198_v15  ;;  %v2629_v13 = vpop.f32.mrb[18].mxu1  ;;  %v1758_v62 = vsel %vm581_vm1, %v1655_v8, 0.0  ;;  %v1979_v16 = vadd.f32 %v1978_v50, %v1977_v28  ;;  %v1867_v23 = vmul.f32 %v3934_v54, %v3934_v54 }
 0x19b   : > { %v1745_v4 = vadd.f32 %v1744_v60, %v1743_v31  ;;  %v1748_v41 = vsel %vm581_vm1, %v1650_v37, 0.0  ;;  %v1327_v14 = vpop.f32.mrb[19].mxu1  ;;  %v1866_v60 = vmul.f32 %v3907_v49, %v3907_v49  ;;  %v1760_v31 = vsel %vm581_vm1, %v1656_v53, 0.0 }
 0x19c   : > { %v1746_v10 = vsel %vm581_vm1, %v1649_v27, 0.0  ;;  %v2604_v36 = vpop.f32.mrb[20].mxu0  ;;  %v1657_v40 = vmul.f32 %v1327_v14, %v1327_v14  ;;  %v1658_v15 = vmul.f32 %v2629_v13, %v2629_v13  ;;  %v1982_v13 = vsel %vm581_vm1, %v1867_v23, 0.0 }
 0x19d   : > { %v1747_v56 = vadd.f32 %v1746_v10, %v1745_v4  ;;  %v1652_v17 = vmul.f32 %v2604_v36, %v2604_v36  ;;  %v1208_v3 = vpop.f32.mrb[21].mxu0  ;;  %v1980_v27 = vsel %vm581_vm1, %v1866_v60, 0.0 }
 0x19e   : > { %v1651_v1 = vmul.f32 %v1208_v3, %v1208_v3  ;;  %v2632_v46 = vpop.f32.mrb[20].mxu1  ;;  %v1762_v49 = vsel %vm581_vm1, %v1657_v40, 0.0  ;;  %v1981_v10 = vadd.f32 %v1980_v27, %v1979_v16  ;;  %v1764_v36 = vsel %vm581_vm1, %v1658_v15, 0.0 }
 0x19f   : > { %v1749_v34 = vadd.f32 %v1748_v41, %v1747_v56  ;;  %v1752_v20 = vsel %vm581_vm1, %v1652_v17, 0.0  ;;  %v1337_v2 = vpop.f32.mrb[21].mxu1  ;;  %v1660_v14 = vmul.f32 %v2632_v46, %v2632_v46 }
 0x1a0   : > { %v1750_v18 = vsel %vm581_vm1, %v1651_v1, 0.0  ;;  %v2607_v22 = vpop.f32.mrb[22].mxu0  ;;  %v1659_v7 = vmul.f32 %v1337_v2, %v1337_v2  ;;  %v1983_v3 = vadd.f32 %v1982_v13, %v1981_v10  ;;  %v1872_v10 = vmul.f32 %v3895_v42, %v3895_v42 }
 0x1a1   : > { %v1751_v47 = vadd.f32 %v1750_v18, %v1749_v34  ;;  %v1654_v57 = vmul.f32 %v2607_v22, %v2607_v22  ;;  %v1218_v48 = vpop.f32.mrb[23].mxu0  ;;  %v1768_v1 = vsel %vm581_vm1, %v1660_v14, 0.0 }
 0x1a2   : > { %v1653_v52 = vmul.f32 %v1218_v48, %v1218_v48  ;;  %v2635_v12 = vpop.f32.mrb[22].mxu1  ;;  %v1766_v56 = vsel %vm581_vm1, %v1659_v7, 0.0  ;;  %v1985_v2 = vadd.f32 %v1984_v44, %v1983_v3 }
 0x1a3   : > { %v1753_v32 = vadd.f32 %v1752_v20, %v1751_v47  ;;  %v1756_v19 = vsel %vm581_vm1, %v1654_v57, 0.0  ;;  %v1347_v21 = vpop.f32.mrb[23].mxu1  ;;  %v1662_v34 = vmul.f32 %v2635_v12, %v2635_v12  ;;  %v1869_v20 = vmul.f32 %v3974_v11, %v3974_v11 }
 0x1a4   : > { %v1754_v43 = vsel %vm581_vm1, %v1653_v52, 0.0  ;;  %v1661_v17 = vmul.f32 %v1347_v21, %v1347_v21  ;;  %v1870_v57 = vmul.f32 %v3977_v61, %v3977_v61  ;;  %v1871_v61 = vmul.f32 %v3892_v39, %v3892_v39 }
 0x1a5   : > { %v1755_v45 = vadd.f32 %v1754_v43, %v1753_v32  ;;  %v1772_v38 = vsel %vm581_vm1, %v1662_v34, 0.0  ;;  %v1986_v48 = vsel %vm581_vm1, %v1869_v20, 0.0  ;;  %v1992_v20 = vsel %vm581_vm1, %v1872_v10, 0.0 }
 0x1a6   : > { %v1770_v18 = vsel %vm581_vm1, %v1661_v17, 0.0  ;;  %v1987_v43 = vadd.f32 %v1986_v48, %v1985_v2 }
 0x1a7   : > { %v1757_v33 = vadd.f32 %v1756_v19, %v1755_v45  ;;  %v350_v37 = vpop.xlane.xlu1 %349 }
 0x1a8   : > { %3018 = vlog2.f32 %v350_v37 }
 0x1a9   : > { %v1759_v4 = vadd.f32 %v1758_v62, %v1757_v33  ;;  %v1988_v62 = vsel %vm581_vm1, %v1870_v57, 0.0 }
 0x1aa   : > { %v1989_v23 = vadd.f32 %v1988_v62, %v1987_v43 }
 0x1ab   : > { %v1761_v41 = vadd.f32 %v1760_v31, %v1759_v4  ;;  %v409_v31 = vmul.f32 %v4084_v25, %v4084_v25 }
 0x1ad   : > { %v1763_v30 = vadd.f32 %v1762_v49, %v1761_v41  ;;  %v410_v13 = vsel %vm368_vm6, %v409_v31, 0.0 }
 0x1af   : > { %v1765_v54 = vadd.f32 %v1764_v36, %v1763_v30  ;;  %v1990_v36 = vsel %vm581_vm1, %v1871_v61, 0.0 }
 0x1b0   : > { %v1991_v42 = vadd.f32 %v1990_v36, %v1989_v23 }
 0x1b1   : > { %v1767_v46 = vadd.f32 %v1766_v56, %v1765_v54 }
 0x1b2   : > { %v3019_v55 = vpop.eup %3018 }
 0x1b3   : > { %v1769_v22 = vadd.f32 %v1768_v1, %v1767_v46  ;;  %v352_v24 = vmul.f32 0.6931472, %v3019_v55  ;;  %v1873_v46 = vmul.f32 %v3916_v51, %v3916_v51 }
 0x1b4   : > { %v2654_v47 = vpop.f32.mrb[24].mxu0 }
 0x1b5   : > { %v1771_v52 = vadd.f32 %v1770_v18, %v1769_v22  ;;  %v1664_v8 = vmul.f32 %v2654_v47, %v2654_v47  ;;  %v1446_v32 = vpop.f32.mrb[25].mxu0  ;;  %v353_v11 = vadd.f32 %v352_v24, %v4056_v35  ;;  %v447_v35 = vpop.xlane.xlu0 %446  ;;  %v1994_v51 = vsel %vm581_vm1, %v1873_v46, 0.0 }
 0x1b6   : > { %v1663_v12 = vmul.f32 %v1446_v32, %v1446_v32  ;;  %v2682_v19 = vpop.f32.mrb[24].mxu1  ;;  %v448_v7 = vmul.f32 %v447_v35, %v447_v35  ;;  %v1993_v32 = vadd.f32 %v1992_v20, %v1991_v42 }
 0x1b7   : > { %v1773_v28 = vadd.f32 %v1772_v38, %v1771_v52  ;;  %v1776_v53 = vsel %vm581_vm1, %v1664_v8, 0.0  ;;  %v367_v60 = vsub.f32 %v353_v11, %v4077_v6  ;;  %v1575_v45 = vpop.f32.mrb[25].mxu1  ;;  %v1672_v52 = vmul.f32 %v2682_v19, %v2682_v19 }
 0x1b8   : > { %v1774_v21 = vsel %vm581_vm1, %v1663_v12, 0.0  ;;  %v2657_v50 = vpop.f32.mrb[26].mxu0  ;;  %v449_v34 = vsel %vm368_vm6, %v448_v7, 0.0  ;;  %v1671_v24 = vmul.f32 %v1575_v45, %v1575_v45  ;;  %v1874_v12 = vmul.f32 %v3919_v5, %v3919_v5 }
 0x1b9   : > { %v1775_v40 = vadd.f32 %v1774_v21, %v1773_v28  ;;  %v1666_v33 = vmul.f32 %v2657_v50, %v2657_v50  ;;  %v1456_v16 = vpop.f32.mrb[27].mxu0  ;;  %v369_v37 = vsel %vm368_vm6, %v367_v60, 0.0  ;;  %v1792_v21 = vsel %vm581_vm1, %v1672_v52, 0.0 }
 0x1ba   : > { %v1665_v15 = vmul.f32 %v1456_v16, %v1456_v16  ;;  %370 = vadd.xlane.f32.xlu0 %v369_v37  ;;  %v2685_v6 = vpop.f32.mrb[26].mxu1  ;;  %v1790_v28 = vsel %vm581_vm1, %v1671_v24, 0.0  ;;  %v1995_v50 = vadd.f32 %v1994_v51, %v1993_v32  ;;  %v1875_v19 = vmul.f32 %v3954_v58, %v3954_v58 }
 0x1bb   : > { %v1777_v27 = vadd.f32 %v1776_v53, %v1775_v40  ;;  %v1780_v4 = vsel %vm581_vm1, %v1666_v33, 0.0  ;;  %v1585_v41 = vpop.f32.mrb[27].mxu1  ;;  %v1674_v60 = vmul.f32 %v2685_v6, %v2685_v6  ;;  %v1996_v61 = vsel %vm581_vm1, %v1874_v12, 0.0 }
 0x1bc   : > { %v1778_v39 = vsel %vm581_vm1, %v1665_v15, 0.0  ;;  %v2660_v49 = vpop.f32.mrb[28].mxu0  ;;  %v1673_v43 = vmul.f32 %v1585_v41, %v1585_v41  ;;  %v1997_v35 = vadd.f32 %v1996_v61, %v1995_v50  ;;  %v1876_v37 = vmul.f32 %v3957_v59, %v3957_v59 }
 0x1bd   : > { %v1779_v25 = vadd.f32 %v1778_v39, %v1777_v27  ;;  %v1668_v14 = vmul.f32 %v2660_v49, %v2660_v49  ;;  %v1466_v26 = vpop.f32.mrb[29].mxu0  ;;  %v1796_v33 = vsel %vm581_vm1, %v1674_v60, 0.0  ;;  %v1998_v15 = vsel %vm581_vm1, %v1875_v19, 0.0 }
 0x1be   : > { %v1667_v30 = vmul.f32 %v1466_v26, %v1466_v26  ;;  %411 = vadd.xlane.f32.xlu0 %v410_v13  ;;  %v2688_v17 = vpop.f32.mrb[28].mxu1  ;;  %v1794_v62 = vsel %vm581_vm1, %v1673_v43, 0.0  ;;  %v1999_v39 = vadd.f32 %v1998_v15, %v1997_v35  ;;  %v1877_v7 = vmul.f32 %v3992_v63, %v3992_v63 }
 0x1bf   : > { %v1781_v56 = vadd.f32 %v1780_v4, %v1779_v25  ;;  %v1784_v54 = vsel %vm581_vm1, %v1668_v14, 0.0  ;;  %v1595_v44 = vpop.f32.mrb[29].mxu1  ;;  %v1676_v16 = vmul.f32 %v2688_v17, %v2688_v17  ;;  %v2000_v41 = vsel %vm581_vm1, %v1876_v37, 0.0 }
 0x1c0   : > { %v1782_v3 = vsel %vm581_vm1, %v1667_v30, 0.0  ;;  %v2663_v1 = vpop.f32.mrb[30].mxu0  ;;  %v1675_v5 = vmul.f32 %v1595_v44, %v1595_v44  ;;  %v2001_v14 = vadd.f32 %v2000_v41, %v1999_v39  ;;  %v1878_v30 = vmul.f32 %v3995_v0, %v3995_v0 }
 0x1c1   : > { %v1783_v18 = vadd.f32 %v1782_v3, %v1781_v56  ;;  %v1670_v55 = vmul.f32 %v2663_v1, %v2663_v1  ;;  %v1476_v22 = vpop.f32.mrb[31].mxu0  ;;  %v1800_v23 = vsel %vm581_vm1, %v1676_v16, 0.0  ;;  %v2002_v56 = vsel %vm581_vm1, %v1877_v7, 0.0 }
 0x1c2   : > { %v1669_v2 = vmul.f32 %v1476_v22, %v1476_v22  ;;  %450 = vadd.xlane.f32.xlu0 %v449_v34  ;;  %v2691_v47 = vpop.f32.mrb[30].mxu1  ;;  %v1798_v27 = vsel %vm581_vm1, %v1675_v5, 0.0  ;;  %v2003_v3 = vadd.f32 %v2002_v56, %v2001_v14  ;;  %v500_v34 = vsel %vm499_vm7, %v3457_v29, 0.0 }
 0x1c3   : > { %v1785_v38 = vadd.f32 %v1784_v54, %v1783_v18  ;;  %v1788_v57 = vsel %vm581_vm1, %v1670_v55, 0.0  ;;  %v1605_v8 = vpop.f32.mrb[31].mxu1  ;;  %v1678_v4 = vmul.f32 %v2691_v47, %v2691_v47  ;;  %v2004_v44 = vsel %vm581_vm1, %v1878_v30, 0.0 }
 0x1c4   : > { %v1786_v48 = vsel %vm581_vm1, %v1669_v2, 0.0  ;;  %v1677_v6 = vmul.f32 %v1605_v8, %v1605_v8  ;;  %v2005_v20 = vadd.f32 %v2004_v44, %v2003_v3 }
 0x1c5   : > { %v1787_v11 = vadd.f32 %v1786_v48, %v1785_v38  ;;  %v1804_v25 = vsel %vm581_vm1, %v1678_v4, 0.0 }
 0x1c6   : > { %v1802_v10 = vsel %vm581_vm1, %v1677_v6, 0.0 }
 0x1c7   : > { %v1789_v53 = vadd.f32 %v1788_v57, %v1787_v11 }
 0x1c9   : > { %v1791_v45 = vadd.f32 %v1790_v28, %v1789_v53 }
 0x1cb   : > { %v1793_v40 = vadd.f32 %v1792_v21, %v1791_v45 }
 0x1cd   : > { %v1795_v31 = vadd.f32 %v1794_v62, %v1793_v40 }
 0x1cf   : > { %v1797_v58 = vadd.f32 %v1796_v33, %v1795_v31 }
 0x1d1   : > { %v1799_v49 = vadd.f32 %v1798_v27, %v1797_v58 }
 0x1d3   : > { %v1801_v36 = vadd.f32 %v1800_v23, %v1799_v49  ;;  %v466_v59 = vpop.xlane.xlu0 %465 }
 0x1d4   : > { %v467_v26 = vmul.f32 %v466_v59, %v466_v59 }
 0x1d5   : > { %v1803_v13 = vadd.f32 %v1802_v10, %v1801_v36 }
 0x1d6   : > { %v468_v17 = vsel %vm368_vm6, %v467_v26, 0.0 }
 0x1d7   : > { %v1805_v63 = vadd.f32 %v1804_v25, %v1803_v13  ;;  %v486_v54 = vpop.xlane.xlu1 %485  ;;  %469 = vadd.xlane.f32.xlu1 %v468_v17 }
 0x1d8   : > { %v487_v1 = vmul.f32 %v486_v54, %v486_v54 }
 0x1da   : > { %v488_v42 = vsel %vm368_vm6, %v487_v1, 0.0 }
 0x1db   : > { %489 = vadd.xlane.f32.xlu0 %v488_v42  ;;  %501 = vadd.xlane.f32.xlu1 %v500_v34 }
 0x1df   : > { %1806 = vadd.xlane.f32.xlu0 %v1805_v63  ;;  %2006 = vadd.xlane.f32.xlu1 %v2005_v20 }
 0x205   : > { %v392_v0 = vpop.xlane.xlu1 %391 }
 0x206   : > { %v393_v46 = vrot.slane %v392_v0, 4 }
 0x208   : > { %v394_v55 = vadd.f32 %v393_v46, %v392_v0 }
 0x20a   : > { %v395_v2 = vrot.slane %v394_v55, 2 }
 0x20c   : > { %v396_v29 = vadd.f32 %v395_v2, %v394_v55 }
 0x20d   : > { %v431_v18 = vpop.xlane.xlu1 %430 }
 0x20e   : > { %v432_v22 = vrot.slane %v431_v18, 4  ;;  %v397_v12 = vrot.slane %v396_v29, 1 }
 0x210   : > { %v433_v24 = vadd.f32 %v432_v22, %v431_v18  ;;  %v398_v50 = vadd.f32 %v397_v12, %v396_v29  ;;  %v510_v29 = vld [vmem:[#allocation3] sm:$0x1] }
 0x212   : > { %v434_v57 = vrot.slane %v433_v24, 2 }
 0x214   : > { %v435_v11 = vadd.f32 %v434_v57, %v433_v24 }
 0x216   : > { %v436_v45 = vrot.slane %v435_v11, 1 }
 0x218   : > { %v437_v33 = vadd.f32 %v436_v45, %v435_v11 }
 0x247   : > { %v371_v38 = vpop.xlane.xlu0 %370 }
 0x248   : > { %v372_v47 = vrot.slane %v371_v38, 4 }
 0x24a   : > { %v373_v48 = vadd.f32 %v372_v47, %v371_v38  ;;  %v366_v38 = vld [vmem:[#allocation2] sm:$0x1] }
 0x24b   : > { %v412_v52 = vpop.xlane.xlu0 %411 }
 0x24c   : > { %v374_v8 = vrot.slane %v373_v48, 2  ;;  %v413_v32 = vrot.slane %v412_v52, 4 }
 0x24e   : > { %v414_v51 = vadd.f32 %v413_v32, %v412_v52  ;;  %v375_v28 = vadd.f32 %v374_v8, %v373_v48  ;;  %v1614_v8 = vld [vmem:[#allocation4] sm:$0x1] }
 0x24f   : > { %v451_v43 = vpop.xlane.xlu0 %450 }
 0x250   : > { %v415_v53 = vrot.slane %v414_v51, 2  ;;  %v452_v21 = vrot.slane %v451_v43, 4  ;;  %v376_v60 = vrot.slane %v375_v28, 1 }
 0x252   : > { %v453_v19 = vadd.f32 %v452_v21, %v451_v43  ;;  %v377_v61 = vadd.f32 %v376_v60, %v375_v28  ;;  %v416_v62 = vadd.f32 %v415_v53, %v414_v51  ;;  %v3183_v51 = vmov (!%p2333_p2), 0  }
 0x253   : > { %3020 = vset.pattern.permute.xlu0 (!%p2333_p2), %v3183_v51  ;;  %v2036_v60 = vshrl.u32 (!%p2333_p2), %v354_v9, 7 }
 0x254   : > { %v454_v5 = vrot.slane %v453_v19, 2  ;;  %2884 = vpush %v377_v61  ;;  %v417_v40 = vrot.slane %v416_v62, 1 }
 0x255   : > { %2886 = vpush %v398_v50  ;;  %v2037_v61 = vsub.s32 (!%p2333_p2), 0, %v2036_v60 }
 0x256   : > { %v418_v16 = vadd.f32 %v417_v40, %v416_v62  ;;  %v455_v35 = vadd.f32 %v454_v5, %v453_v19 }
 0x258   : > { %2888 = vpush %v418_v16  ;;  %v456_v31 = vrot.slane %v455_v35, 1 }
 0x259   : > { %2890 = vpush %v437_v33 }
 0x25a   : > { %v457_v37 = vadd.f32 %v456_v31, %v455_v35 }
 0x25c   : > { %2892 = vpush %v457_v37 }
 0x264   : > { %v470_v15 = vpop.xlane.xlu1 %469 }
 0x265   : > { %v471_v27 = vrot.slane %v470_v15, 4 }
 0x267   : > { %v472_v6 = vadd.f32 %v471_v27, %v470_v15 }
 0x268   : > { %v502_v58 = vpop.xlane.xlu1 %501  ;;  %v490_v23 = vpop.xlane.xlu0 %489 }
 0x269   : > { %v473_v4 = vrot.slane %v472_v6, 2  ;;  %v503_v39 = vrot.slane %v502_v58, 4  ;;  %v491_v49 = vrot.slane %v490_v23, 4 }
 0x26b   : > { %v504_v7 = vadd.f32 %v503_v39, %v502_v58  ;;  %v492_v41 = vadd.f32 %v491_v49, %v490_v23  ;;  %v474_v10 = vadd.f32 %v473_v4, %v472_v6 }
 0x26c   : > { %v2007_v36 = vpop.xlane.xlu1 %2006  ;;  %v1807_v59 = vpop.xlane.xlu0 %1806 }
 0x26d   : > { %v505_v25 = vrot.slane %v504_v7, 2  ;;  %v493_v14 = vrot.slane %v492_v41, 2  ;;  %v2008_v26 = vrot.slane %v2007_v36, 4  ;;  %v1808_v13 = vrot.slane %v1807_v59, 4 }
 0x26e   : > { %v475_v30 = vrot.slane %v474_v10, 1 }
 0x26f   : > { %v2009_v56 = vadd.f32 %v2008_v26, %v2007_v36  ;;  %v1809_v17 = vadd.f32 %v1808_v13, %v1807_v59  ;;  %v494_v63 = vadd.f32 %v493_v14, %v492_v41  ;;  %v506_v54 = vadd.f32 %v505_v25, %v504_v7 }
 0x270   : > { %v476_v3 = vadd.f32 %v475_v30, %v474_v10 }
 0x271   : > { %v2010_v1 = vrot.slane %v2009_v56, 2  ;;  %v1810_v34 = vrot.slane %v1809_v17, 2  ;;  %v495_v44 = vrot.slane %v494_v63, 1  ;;  %v507_v42 = vrot.slane %v506_v54, 1 }
 0x272   : > { %2894 = vpush %v476_v3 }
 0x273   : > { %v2011_v20 = vadd.f32 %v2010_v1, %v2009_v56  ;;  %v1811_v0 = vadd.f32 %v1810_v34, %v1809_v17  ;;  %v496_v46 = vadd.f32 %v495_v44, %v494_v63  ;;  %v508_v18 = vadd.f32 %v507_v42, %v506_v54 }
 0x275   : > { %2896 = vpush %v496_v46  ;;  %v1812_v55 = vrot.slane %v1811_v0, 1  ;;  %v2012_v22 = vrot.slane %v2011_v20, 1 }
 0x276   : > { %2898 = vpush %v508_v18 }
 0x277   : > { %v1813_v2 = vadd.f32 %v1812_v55, %v1811_v0  ;;  %v2013_v24 = vadd.f32 %v2012_v22, %v2011_v20 }
 0x279   : > { %2900 = vpush %v1813_v2 }
 0x27a   : > { %2902 = vpush %v2013_v24 }
 0x285   : > { %s2885_s7 = spop %2884 }
 0x286   : > { %v379_v47 = vstv %s2885_s7  ;;  %s2887_s9 = spop %2886 }
 0x287   : > { %v380_v57 = vadd.f32 %v379_v47, %v366_v38 }
 0x289   : > { %382 = vst.msk [vmem:[#allocation2] sm:$0x1] %vm381_vm8, %v380_v57  ;;  %s2889_s26 = spop %2888 }
 0x28a   : > { %s420_s12 = sadd.f32 %s2889_s26, %s2887_s9  ;;  %s2891_s8 = spop %2890 }
 0x28c   : > { %s439_s13 = sadd.f32 %s2891_s8, %s420_s12 }
 0x28d   : > { %s2893_s11 = spop %2892 }
 0x28e   : > { %s440_s29 = sadd.f32 %s2889_s26, %s439_s13 }
 0x290   : > { %s459_s3 = sadd.f32 %s2893_s11, %s440_s29  ;;  %v2025_v28 = vld [vmem:[#allocation2] sm:$0x1] (!%p2333_p2) }
 0x291   : > { %v2026_v50 = vmul.f32 (!%p2333_p2), 0.03125, %v2025_v28 }
 0x2a3   : > { %s2895_s24 = spop %2894 }
 0x2a4   : > { %s478_s28 = sadd.f32 %s2895_s24, %s459_s3 }
 0x2a6   : > { %s479_s5 = sadd.f32 %s2891_s8, %s478_s28  ;;  %s2897_s6 = spop %2896 }
 0x2a7   : > { %s2899_s0 = spop %2898 }
 0x2a8   : > { %s480_s1 = sadd.f32 %s2895_s24, %s479_s5  ;;  %s511_s2 = smul.f32 2.0, %s2899_s0 }
 0x2a9   : > { %s4321_s0 = scalar_lea.vmem (!%p2333_p2), [#allocation8], %s3372_s27 }
 0x2aa   : > { %s498_s7 = sadd.f32 %s2897_s6, %s480_s1  ;;  %s2901_s23 = spop %2900 }
 0x2ab   : > { %s2903_s18 = spop %2902 }
 0x2ac   : > { %s512_s20 = ssub.f32 %s498_s7, %s511_s2  ;;  %s2015_s19 = smul.f32 2.0, %s2903_s18 }
 0x2ae   : > { %s513_s14 = sadd.f32 24.0, %s512_s20 }
 0x2af   : > { %s2016_s9 = ssub.f32 %s2901_s23, %s2015_s19 }
 0x2b0   : > { %v514_v48 = vstv %s513_s14  ;;  %2024 = sbr.rel (%p2333_p2) target bundleno = 841 (0x349), region = 48 }
 0x2b1   : > { %v515_v52 = vadd.f32 %v514_v48, %v510_v29  ;;  %s2017_s26 = sadd.f32 512.0, %s2016_s9 }
 0x2b3   : > { %516 = vst.msk [vmem:[#allocation3] sm:$0x1] %vm381_vm8, %v515_v52  ;;  %v2018_v32 = vstv %s2017_s26 }
 0x2b4   : > { %v2019_v12 = vadd.f32 %v2018_v32, %v1614_v8 }
 0x2b6   : > { %2020 = vst.msk [vmem:[#allocation4] sm:$0x1] %vm381_vm8, %v2019_v12 }
 0x2ba   : > { %v2027_v11 = vld [vmem:[#allocation3] sm:$0x1] }
 0x2bb   : > { %v2028_v43 = vmul.f32 0.0034722222, %v2027_v11 }
 0x2bd   : > { %v2029_v53 = vld [vmem:[#allocation4] sm:$0x1] }
 0x2be   : > { %v2030_v21 = vmul.f32 7.6293945e-06, %v2029_v53 }
 0x2c0   : > { %v2031_v45 = vadd.f32 %v2030_v21, %v2028_v43 }
 0x2c2   : > { %v2032_v19 = vmul.f32 3.125e-06, %v2031_v45 }
 0x2c4   : > { %v2033_v62 = vadd.f32 %v2032_v19, %v2026_v50 }
 0x2c6   : > { %v2038_v5 = vrot.slane %v2033_v62, %v2037_v61 }
 0x2c8   : > { %2040 = vperm.xlu0 %3020, %v2038_v5  }
 0x347   : > { %v2041_v40 = vpop.permute.xlu0 %2040 }
 0x348   : > { %2043 = vst [vmem:[%s4321_s0] sm:$0xff] %v2041_v40 }
 0x349 PF: > { %s2335_s1 = sshll.u32 %s3161_s22, 7  ;;  %s4322_s21 = scalar_lea.vmem [#allocation8], %s3372_s27 }
 0x34a   : > { %s4224_s20 = scalar_lea.hbm %s4288_s4, %s2335_s1  ;;  %s2058_s23 = sshll.u32 %s4322_s21, 4  ;;  %s2059_s23 = int_to_ptr.vmem [resolvable:$true] %s2058_s23 }
 0x34b   : > { %s4323_s14 = sand.u32 1, %s3137_s16   ;;  %s3051_s6 = scalar_lea.vmem %s2059_s23, 128 }
 0x34c   : > { %s2045_s18 = scalar_lea.sflag [#allocation7], %s4323_s14  ;;  %p3052_p3 = scmp.ne.s32.totalorder %s2059_s23, %s3051_s6 }
 0x34d   : > { %p4324_p0 = scmp.ne.s32.totalorder %s4311_s30, 0  ;;  %s3184_s12 = smov [#allocation8]  }
 0x34e   : > { %s3055_s8 = sshll.u32 %s3184_s12, 4  ;;  %s3056_s8 = int_to_ptr.vmem [resolvable:$false] %s3055_s8 }
 0x34f   : > { %p3053_p1 = pnand %p3052_p3, %p4324_p0  ;;  %s3057_s13 = scalar_lea.vmem %s3056_s8, 256 }
 0x350   : > { %p3058_p8 = scmp.lt.s32.totalorder %s2059_s23, %s3056_s8  ;;  %p3059_p5 = scmp.lt.s32.totalorder %s3057_s13, %s3051_s6 }
 0x351   : > { %p3054_p4 = pneg %p3053_p1 }
 0x352   : > { %p3060_p10 = por %p3059_p5, %p3058_p8 }
 0x354   : > { %p3061_p11 = pnand %p3060_p10, %p3054_p4 }
 0x356   : > { %3064 = shalt.err (!%p3061_p11)
}
 0x357   : > { %s3065_s22 = scalar_lea.hbm %s4224_s20, 128  ;;  %s3069_s11 = scalar_lea.hbm %s4288_s4, 256 }
 0x358   : > { %p3066_p6 = scmp.ne.s32.totalorder %s4224_s20, %s3065_s22  ;;  %p3070_p12 = scmp.lt.u32.totalorder %s4224_s20, %s4288_s4 }
 0x359   : > { %p3071_p7 = scmp.lt.u32.totalorder %s3069_s11, %s3065_s22  ;;  %p3073_p3 = scmp.lt.u32.totalorder %s3065_s22, %s4224_s20 }
 0x35a   : > { %p3067_p9 = pnand %p3066_p6, %p4324_p0 }
 0x35b   : > { %p3072_p2 = por %p3071_p7, %p3070_p12 }
 0x35c   : > { %p3068_p13 = pneg %p3067_p9 }
 0x35d   : > { %p3074_p1 = por %p3073_p3, %p3072_p2 }
 0x35f   : > { %p3075_p4 = pnand %p3074_p1, %p3068_p13 }
 0x361   : > { %3078 = shalt.err (!%p3075_p4)
}
 0x362   : > { %2906 = dma.vmem_to_hbm [thread:$0]  (%p4324_p0), %s2059_s23, 128, %s4224_s20, %s2045_s18  }
 0x363 PF: > { %p2917_p8 = scmp.ge.s32.totalorder %s3173_s25, 2  ;;  %s2070_s28 = sand.u32 1, %s3133_s15  }
 0x364   : > { %p4325_p5 = scmp.ne.s32.totalorder %s4312_s10, 0  ;;  %s2071_s5 = scalar_lea.sflag [#allocation7], %s2070_s28 }
 0x366   : > { %p2913_p10 = pnand %p2917_p8, %p4325_p5 }
 0x368   : > { %3128 = dma.done.wait (!%p2913_p10), %s2071_s5, 128  }
 0x369   : > { %3130 = vsyncadd (!%p2913_p10), %s2071_s5, 4294967168  ;;  %s20_s25 = sadd.s32 1, %s3173_s25   ;;  %s4326_s7 = sld [smem:[#allocation17_spill]] }
 0x36a   : > { %p17_p11 = scmp.ge.s32.totalorder %s20_s25, 6   ;;  %s4327_s18 = sld [smem:[#allocation11_spill]] }
 0x36b   : > { %s4328_s19 = sld [smem:[#allocation12_spill]]  ;;  %s4329_s20 = sld [smem:[#allocation18_spill]] }
 0x36c   : > { %s4330_s21 = sld [smem:[#allocation13_spill]]  ;;  %s4331_s22 = sld [smem:[#allocation14_spill]] }
 0x36d   : > { %s4332_s23 = sld [smem:[#allocation15_spill]]  ;;  %s4333_s24 = sld [smem:[#allocation16_spill]] }
 0x36e   : > { %s4334_s15 = smov %s3137_s16  ;;  %s4335_s16 = smov %s3141_s17 }
 0x36f   : > { %s4336_s17 = smov %s4326_s7  ;;  %19 = sbr.rel (!%p17_p11) target bundleno = 14 (0xe), region = 98 }
 0x376   :  { %2076 = vsyncpa [#allocation6], 1 }
 0x377   :  { %2078 = vsyncpa [#allocation6 + $0x1], 1 }
 0x378   :  { %2079 = vsyncpa [#allocation7], 1 }
 0x379   :  { %2081 = vsyncpa [#allocation7 + $0x1], 1 }

</bundles_post_ra>
